<compile_context>
chip_gen: v6e
topology: v6e:2x2x1
jax: 0.10.0
libtpu: 0.0.40
codegen_flags: <defaults>
</compile_context>

<pallas_src>
import functools
import math

import jax
import jax.numpy as jnp
from jax import lax
from jax.experimental import pallas as pl
from jax.experimental.pallas import tpu as pltpu

LN_EPS = 1e-5     # nn.LayerNorm default eps
RMS_EPS = 1e-6    # TODO(synk): RMSNorm module not shown; assume eps=1e-6 with learnable scale.
VMEM_LIMIT_BYTES = 64 * 1024 * 1024


def _layernorm_f32(x, g, b):
    mu = jnp.mean(x, axis=-1, keepdims=True)
    var = jnp.mean((x - mu) ** 2, axis=-1, keepdims=True)
    return (x - mu) * lax.rsqrt(var + LN_EPS) * g + b


# ---------------------------------------------------------------------------
# Kernel 1: LayerNorm1 -> qkv -> RMSNorm(qk) -> MHA in-projection.
# Grid: (batch, seq_tiles).  Emits q, k, v in bf16.
# ---------------------------------------------------------------------------
def _qkv_proj_kernel(x_ref, g1_ref, b1_ref, wqk_ref, wv_ref, grms_ref,
                     wq_ref, wk_ref, wvin_ref, bq_ref, bk_ref, bv_ref,
                     q_ref, k_ref, v_ref):
    x = x_ref[0]                                     # (tn, D) f32
    D = x.shape[-1]

    xn = _layernorm_f32(x, g1_ref[...], b1_ref[...])
    xn_bf = xn.astype(jnp.bfloat16)

    # self.qkv = Linear(D, 3D, bias=False); weight pre-split into qk / v columns.
    qk = jnp.dot(xn_bf, wqk_ref[...], preferred_element_type=jnp.float32)   # (tn, 2D)
    v = jnp.dot(xn_bf, wv_ref[...], preferred_element_type=jnp.float32)     # (tn, D)

    # RMSNorm over the 2D-wide qk slab (f32).
    ms = jnp.mean(qk * qk, axis=-1, keepdims=True)
    qk = qk * lax.rsqrt(ms + RMS_EPS) * grms_ref[...]

    q_bf = qk[:, :D].astype(jnp.bfloat16)
    k_bf = qk[:, D:].astype(jnp.bfloat16)
    v_bf = v.astype(jnp.bfloat16)

    # nn.MultiheadAttention in-projection (bias=True), weight pre-split per stream.
    q_ref[0] = (jnp.dot(q_bf, wq_ref[...], preferred_element_type=jnp.float32)
                + bq_ref[...]).astype(q_ref.dtype)
    k_ref[0] = (jnp.dot(k_bf, wk_ref[...], preferred_element_type=jnp.float32)
                + bk_ref[...]).astype(k_ref.dtype)
    v_ref[0] = (jnp.dot(v_bf, wvin_ref[...], preferred_element_type=jnp.float32)
                + bv_ref[...]).astype(v_ref.dtype)


# ---------------------------------------------------------------------------
# Kernel 2: flash-style attention, heads batched, KV-blocked online softmax.
# Grid: (batch, q_tiles, kv_tiles).  q/k/v blocks are (1, H, tile, head_dim).
# ---------------------------------------------------------------------------
def _flash_attn_kernel(scale, q_ref, k_ref, v_ref, o_ref, m_sc, l_sc, acc_sc):
    ki = pl.program_id(2)

    @pl.when(ki == 0)
    def _():
        m_sc[...] = jnp.full_like(m_sc, -jnp.inf)
        l_sc[...] = jnp.zeros_like(l_sc)
        acc_sc[...] = jnp.zeros_like(acc_sc)

    q = q_ref[0]                                     # (H, tq, hd) bf16
    k = k_ref[0]                                     # (H, tk, hd) bf16
    v = v_ref[0]                                     # (H, tk, hd) bf16

    s = jnp.einsum("hqd,hkd->hqk", q, k,
                   preferred_element_type=jnp.float32) * scale        # (H, tq, tk) f32
    m_prev = m_sc[...]
    m_new = jnp.maximum(m_prev, jnp.max(s, axis=-1, keepdims=True))
    alpha = jnp.exp(m_prev - m_new)
    p = jnp.exp(s - m_new)
    l_sc[...] = alpha * l_sc[...] + jnp.sum(p, axis=-1, keepdims=True)
    acc_sc[...] = alpha * acc_sc[...] + jnp.einsum(
        "hqk,hkd->hqd", p.astype(v.dtype), v, preferred_element_type=jnp.float32)
    m_sc[...] = m_new

    @pl.when(ki == pl.num_programs(2) - 1)
    def _():
        inv_l = pl.reciprocal(l_sc[...], approx=True)     # EUP, frees the VPU divide
        o_ref[0] = (acc_sc[...] * inv_l).astype(o_ref.dtype)


# ---------------------------------------------------------------------------
# Kernel 3: folded (out_proj @ self.out) + resid_1 -> LayerNorm2 -> MLP -> + resid_2.
# Grid: (batch, seq_tiles).
# ---------------------------------------------------------------------------
def _out_mlp_kernel(attn_ref, x_ref, wo_ref, bo_ref, g2_ref, b2_ref,
                    w1_ref, bm1_ref, w2_ref, bm2_ref, o_ref):
    attn = attn_ref[0]                               # (tn, D) bf16
    proj = jnp.dot(attn, wo_ref[...], preferred_element_type=jnp.float32) + bo_ref[...]
    x1 = proj + x_ref[0]                             # + resid_1

    xn2 = _layernorm_f32(x1, g2_ref[...], b2_ref[...])
    # TODO(synk): MLP module body not shown; assume Linear(D,4D)->GELU(tanh)->Linear(4D,D), both biased.
    h1 = jnp.dot(xn2.astype(jnp.bfloat16), w1_ref[...],
                 preferred_element_type=jnp.float32) + bm1_ref[...]
    h1 = jax.nn.gelu(h1, approximate=True)
    y = jnp.dot(h1.astype(jnp.bfloat16), w2_ref[...],
                preferred_element_type=jnp.float32) + bm2_ref[...]
    o_ref[0] = (y + x1).astype(o_ref.dtype)          # + resid_2


# ---------------------------------------------------------------------------
# Wrapper
# ---------------------------------------------------------------------------
def _pick_seq_tile(n, cap=512):
    if n <= cap:
        return n
    for t in range(cap - cap % 8, 7, -8):
        if n % t == 0:
            return t
    return n


def _full_spec(shape):
    zeros = (0,) * len(shape)
    return pl.BlockSpec(shape, lambda *_: zeros)


def transformer_pallas(x, params, n_heads, *, seq_tile=None):
    B, N, D = x.shape
    assert D % n_heads == 0
    hd = D // n_heads
    tn = seq_tile if seq_tile is not None else _pick_seq_tile(N)
    assert N % tn == 0
    nt = N // tn
    scale = 1.0 / math.sqrt(hd)
    f32, bf16 = jnp.float32, jnp.bfloat16

    # ---------------- weight prep (offline folds, exact in f32; cast to bf16 for MXU) ----
    w_qkv = params["w_qkv"].astype(f32)
    w_qk = w_qkv[:, :2 * D].astype(bf16)                       # (D, 2D)
    w_v = w_qkv[:, 2 * D:].astype(bf16)                        # (D, D)

    w_in = params["w_in"].astype(f32)                          # (D, 3D)
    b_in = params["b_in"].astype(f32)                          # (1, 3D)
    w_in_q = w_in[:, :D].astype(bf16)
    w_in_k = w_in[:, D:2 * D].astype(bf16)
    w_in_v = w_in[:, 2 * D:].astype(bf16)
    b_in_q, b_in_k, b_in_v = b_in[:, :D], b_in[:, D:2 * D], b_in[:, 2 * D:]

    # Fold self.out (bias=False) into the MHA out_proj (no nonlinearity between => exact).
    w_out = params["w_out"].astype(f32)
    w_op_folded = (params["w_op"].astype(f32) @ w_out).astype(bf16)    # (D, D)
    b_op_folded = params["b_op"].astype(f32) @ w_out                   # (1, D)

    g1, b1 = params["g1"].astype(f32), params["b1"].astype(f32)
    g_rms = params["g_rms"].astype(f32)
    g2, b2 = params["g2"].astype(f32), params["b2"].astype(f32)
    w1, bm1 = params["w1"].astype(bf16), params["bm1"].astype(f32)
    w2, bm2 = params["w2"].astype(bf16), params["bm2"].astype(f32)

    cparams_2d = pltpu.CompilerParams(
        dimension_semantics=("parallel", "parallel"),
        vmem_limit_bytes=VMEM_LIMIT_BYTES)
    cparams_3d = pltpu.CompilerParams(
        dimension_semantics=("parallel", "parallel", "arbitrary"),
        vmem_limit_bytes=VMEM_LIMIT_BYTES)

    seq_spec = pl.BlockSpec((1, tn, D), lambda b, i: (b, i, 0))

    # ---- kernel 1: norm1 + qkv + RMSNorm(qk) + MHA in-projection -> q, k, v (bf16) ----
    proj_weights = (g1, b1, w_qk, w_v, g_rms, w_in_q, w_in_k, w_in_v,
                    b_in_q, b_in_k, b_in_v)
    q, k, v = pl.pallas_call(
        _qkv_proj_kernel,
        out_shape=(jax.ShapeDtypeStruct((B, N, D), bf16),) * 3,
        grid_spec=pltpu.PrefetchScalarGridSpec(
            num_scalar_prefetch=0,
            grid=(B, nt),
            in_specs=[seq_spec] + [_full_spec(w.shape) for w in proj_weights],
            out_specs=(seq_spec,) * 3,
        ),
        compiler_params=cparams_2d,
    )(x, *proj_weights)

    # Head split is cheap XLA layout glue so the kernels stay free of lane relayouts.
    def to_heads(t):
        return jnp.swapaxes(t.reshape(B, N, n_heads, hd), 1, 2)   # (B, H, N, hd)

    qh, kh, vh = to_heads(q), to_heads(k), to_heads(v)

    # ---- kernel 2: KV-blocked flash attention, heads batched ----
    q_spec = pl.BlockSpec((1, n_heads, tn, hd), lambda b, qi, ki: (b, 0, qi, 0))
    kv_spec = pl.BlockSpec((1, n_heads, tn, hd), lambda b, qi, ki: (b, 0, ki, 0))
    attn_h = pl.pallas_call(
        functools.partial(_flash_attn_kernel, scale),
        out_shape=jax.ShapeDtypeStruct((B, n_heads, N, hd), bf16),
        grid_spec=pltpu.PrefetchScalarGridSpec(
            num_scalar_prefetch=0,
            grid=(B, nt, nt),
            in_specs=[q_spec, kv_spec, kv_spec],
            out_specs=q_spec,
            scratch_shapes=[pltpu.VMEM((n_heads, tn, 1), jnp.float32),
                            pltpu.VMEM((n_heads, tn, 1), jnp.float32),
                            pltpu.VMEM((n_heads, tn, hd), jnp.float32)],
        ),
        compiler_params=cparams_3d,
    )(qh, kh, vh)

    # Merge heads back (XLA glue), lane-dense (tn, D) slabs for the epilogue kernel.
    attn = jnp.swapaxes(attn_h, 1, 2).reshape(B, N, D)

    # ---- kernel 3: folded out-proj + resid_1 + norm2 + MLP + resid_2 ----
    mlp_weights = (w_op_folded, b_op_folded, g2, b2, w1, bm1, w2, bm2)
    out = pl.pallas_call(
        _out_mlp_kernel,
        out_shape=jax.ShapeDtypeStruct((B, N, D), x.dtype),
        grid_spec=pltpu.PrefetchScalarGridSpec(
            num_scalar_prefetch=0,
            grid=(B, nt),
            in_specs=[seq_spec, seq_spec] + [_full_spec(w.shape) for w in mlp_weights],
            out_specs=seq_spec,
        ),
        compiler_params=cparams_2d,
    )(attn, x, *mlp_weights)
    return out


# ---------------------------------------------------------------------------
# Pure-JAX (f32) reference mirroring the PyTorch forward pass.
# ---------------------------------------------------------------------------
def transformer_ref(x, p, n_heads):
    B, N, D = x.shape
    hd = D // n_heads

    def ln(z, g, b):
        mu = jnp.mean(z, -1, keepdims=True)
        var = jnp.mean((z - mu) ** 2, -1, keepdims=True)
        return (z - mu) * lax.rsqrt(var + LN_EPS) * g + b

    resid1 = x
    xn = ln(x, p["g1"], p["b1"])
    qkv = xn @ p["w_qkv"]
    qk, v = qkv[..., :2 * D], qkv[..., 2 * D:]
    qk = qk * lax.rsqrt(jnp.mean(qk * qk, -1, keepdims=True) + RMS_EPS) * p["g_rms"]
    q, k = qk[..., :D], qk[..., D:]
    qp = q @ p["w_in"][:, :D] + p["b_in"][:, :D]
    kp = k @ p["w_in"][:, D:2 * D] + p["b_in"][:, D:2 * D]
    vp = v @ p["w_in"][:, 2 * D:] + p["b_in"][:, 2 * D:]
    qh = qp.reshape(B, N, n_heads, hd)
    kh = kp.reshape(B, N, n_heads, hd)
    vh = vp.reshape(B, N, n_heads, hd)
    s = jnp.einsum("bqhd,bkhd->bhqk", qh, kh) / math.sqrt(hd)
    pr = jax.nn.softmax(s, axis=-1)
    o = jnp.einsum("bhqk,bkhd->bqhd", pr, vh).reshape(B, N, D)
    o = o @ p["w_op"] + p["b_op"]
    o = o @ p["w_out"]
    x1 = o + resid1
    xn2 = ln(x1, p["g2"], p["b2"])
    h = jax.nn.gelu(xn2 @ p["w1"] + p["bm1"], approximate=True)
    y = h @ p["w2"] + p["bm2"]
    return y + x1


if __name__ == "__main__":
    B, N, D, H = 2, 8, 32, 4

    x = jax.random.normal(jax.random.PRNGKey(0), (B, N, D), jnp.float32)
    keys = jax.random.split(jax.random.PRNGKey(1), 16)

    def wn(key, shape, s=0.05):
        return jax.random.normal(key, shape, jnp.float32) * s

    params = {
        "g1": 1.0 + wn(keys[0], (1, D)),
        "b1": wn(keys[1], (1, D)),
        "w_qkv": wn(keys[2], (D, 3 * D)),
        "g_rms": 1.0 + wn(keys[3], (1, 2 * D)),
        "w_in": wn(keys[4], (D, 3 * D)),
        "b_in": wn(keys[5], (1, 3 * D)),
        "w_op": wn(keys[6], (D, D)),
        "b_op": wn(keys[7], (1, D)),
        "w_out": wn(keys[8], (D, D)),
        "g2": 1.0 + wn(keys[9], (1, D)),
        "b2": wn(keys[10], (1, D)),
        "w1": wn(keys[11], (D, 4 * D)),
        "bm1": wn(keys[12], (1, 4 * D)),
        "w2": wn(keys[13], (4 * D, D)),
        "bm2": wn(keys[14], (1, D)),
    }

    run = jax.jit(functools.partial(transformer_pallas, n_heads=H))
    out = jax.block_until_ready(run(x, params))

    ref = transformer_ref(x, params, H)
    assert out.shape == (B, N, D)
    max_err = float(jnp.max(jnp.abs(out - ref)))
    # bf16 MXU operands (f32 accumulation) vs f32 reference -> loosen tolerance.
    assert jnp.allclose(out, ref, atol=2e-2, rtol=2e-2), f"max_err={max_err}"

    print("KERNEL_OK")
</pallas_src>

<mosaic_0001>
module attributes {stable_mosaic.version = 11 : i64} {
  func.func @_qkv_proj_kernel(%arg0: i32, %arg1: i32, %arg2: memref<1x8x32xf32, #tpu.memory_space<vmem>>, %arg3: memref<1x32xf32, #tpu.memory_space<vmem>>, %arg4: memref<1x32xf32, #tpu.memory_space<vmem>>, %arg5: memref<32x64xbf16, #tpu.memory_space<vmem>>, %arg6: memref<32x32xbf16, #tpu.memory_space<vmem>>, %arg7: memref<1x64xf32, #tpu.memory_space<vmem>>, %arg8: memref<32x32xbf16, #tpu.memory_space<vmem>>, %arg9: memref<32x32xbf16, #tpu.memory_space<vmem>>, %arg10: memref<32x32xbf16, #tpu.memory_space<vmem>>, %arg11: memref<1x32xf32, #tpu.memory_space<vmem>>, %arg12: memref<1x32xf32, #tpu.memory_space<vmem>>, %arg13: memref<1x32xf32, #tpu.memory_space<vmem>>, %arg14: memref<1x8x32xbf16, #tpu.memory_space<vmem>>, %arg15: memref<1x8x32xbf16, #tpu.memory_space<vmem>>, %arg16: memref<1x8x32xbf16, #tpu.memory_space<vmem>>) attributes {dimension_semantics = [#tpu.dimension_semantics<parallel>, #tpu.dimension_semantics<parallel>], iteration_bounds = array<i64: 2, 1>, scalar_prefetch = 0 : i64, scratch_operands = 0 : i64, tpu.core_type = #tpu.core_type<tc>, window_params = [{transform_indices = @transform_0, window_bounds = array<i64: 1, 8, 32>}, {pipeline_mode = #tpu.pipeline_mode<synchronous>, transform_indices = @transform_1, window_bounds = array<i64: 1, 32>}, {pipeline_mode = #tpu.pipeline_mode<synchronous>, transform_indices = @transform_2, window_bounds = array<i64: 1, 32>}, {pipeline_mode = #tpu.pipeline_mode<synchronous>, transform_indices = @transform_3, window_bounds = array<i64: 32, 64>}, {pipeline_mode = #tpu.pipeline_mode<synchronous>, transform_indices = @transform_4, window_bounds = array<i64: 32, 32>}, {pipeline_mode = #tpu.pipeline_mode<synchronous>, transform_indices = @transform_5, window_bounds = array<i64: 1, 64>}, {pipeline_mode = #tpu.pipeline_mode<synchronous>, transform_indices = @transform_6, window_bounds = array<i64: 32, 32>}, {pipeline_mode = #tpu.pipeline_mode<synchronous>, transform_indices = @transform_7, window_bounds = array<i64: 32, 32>}, {pipeline_mode = #tpu.pipeline_mode<synchronous>, transform_indices = @transform_8, window_bounds = array<i64: 32, 32>}, {pipeline_mode = #tpu.pipeline_mode<synchronous>, transform_indices = @transform_9, window_bounds = array<i64: 1, 32>}, {pipeline_mode = #tpu.pipeline_mode<synchronous>, transform_indices = @transform_10, window_bounds = array<i64: 1, 32>}, {pipeline_mode = #tpu.pipeline_mode<synchronous>, transform_indices = @transform_11, window_bounds = array<i64: 1, 32>}, {transform_indices = @transform_12, window_bounds = array<i64: 1, 8, 32>}, {transform_indices = @transform_13, window_bounds = array<i64: 1, 8, 32>}, {transform_indices = @transform_14, window_bounds = array<i64: 1, 8, 32>}]} {
    %c0 = arith.constant 0 : index
    %c0_0 = arith.constant 0 : index
    %c0_1 = arith.constant 0 : index
    %0 = vector.load %arg2[%c0, %c0_0, %c0_1] : memref<1x8x32xf32, #tpu.memory_space<vmem>>, vector<1x8x32xf32>
    %1 = vector.shape_cast %0 : vector<1x8x32xf32> to vector<8x32xf32>
    %c0_2 = arith.constant 0 : index
    %c0_3 = arith.constant 0 : index
    %2 = vector.load %arg3[%c0_2, %c0_3] : memref<1x32xf32, #tpu.memory_space<vmem>>, vector<1x32xf32>
    %c0_4 = arith.constant 0 : index
    %c0_5 = arith.constant 0 : index
    %3 = vector.load %arg4[%c0_4, %c0_5] : memref<1x32xf32, #tpu.memory_space<vmem>>, vector<1x32xf32>
    %cst = arith.constant dense<0.000000e+00> : vector<8xf32>
    %4 = vector.multi_reduction <add>, %1, %cst [1] : vector<8x32xf32> to vector<8xf32>
    %5 = vector.shape_cast %4 : vector<8xf32> to vector<8x1xf32>
    %cst_6 = arith.constant 3.200000e+01 : f32
    %6 = vector.broadcast %cst_6 : f32 to vector<8x1xf32>
    %7 = arith.divf %5, %6 : vector<8x1xf32>
    %8 = vector.broadcast %7 : vector<8x1xf32> to vector<8x32xf32>
    %9 = arith.subf %1, %8 : vector<8x32xf32>
    %10 = arith.mulf %9, %9 : vector<8x32xf32>
    %cst_7 = arith.constant dense<0.000000e+00> : vector<8xf32>
    %11 = vector.multi_reduction <add>, %10, %cst_7 [1] : vector<8x32xf32> to vector<8xf32>
    %12 = vector.shape_cast %11 : vector<8xf32> to vector<8x1xf32>
    %cst_8 = arith.constant 3.200000e+01 : f32
    %13 = vector.broadcast %cst_8 : f32 to vector<8x1xf32>
    %14 = arith.divf %12, %13 : vector<8x1xf32>
    %15 = vector.broadcast %7 : vector<8x1xf32> to vector<8x32xf32>
    %16 = arith.subf %1, %15 : vector<8x32xf32>
    %cst_9 = arith.constant 9.99999974E-6 : f32
    %17 = vector.broadcast %cst_9 : f32 to vector<8x1xf32>
    %18 = arith.addf %14, %17 : vector<8x1xf32>
    %19 = math.rsqrt %18 : vector<8x1xf32>
    %20 = vector.broadcast %19 : vector<8x1xf32> to vector<8x32xf32>
    %21 = arith.mulf %16, %20 : vector<8x32xf32>
    %22 = vector.broadcast %2 : vector<1x32xf32> to vector<8x32xf32>
    %23 = arith.mulf %21, %22 : vector<8x32xf32>
    %24 = vector.broadcast %3 : vector<1x32xf32> to vector<8x32xf32>
    %25 = arith.addf %23, %24 : vector<8x32xf32>
    %26 = arith.truncf %25 : vector<8x32xf32> to vector<8x32xbf16>
    %c0_10 = arith.constant 0 : index
    %c0_11 = arith.constant 0 : index
    %27 = vector.load %arg5[%c0_10, %c0_11] : memref<32x64xbf16, #tpu.memory_space<vmem>>, vector<32x64xbf16>
    %cst_12 = arith.constant dense<0.000000e+00> : vector<8x64xf32>
    %28 = tpu.matmul %26, %27, %cst_12 {dimension_numbers = #tpu.dot_dimension_numbers<[1], [0], [0], [1], [0, 0, 1, 1], [], []>} : vector<8x32xbf16>, vector<32x64xbf16>, vector<8x64xf32> -> vector<8x64xf32>
    %c0_13 = arith.constant 0 : index
    %c0_14 = arith.constant 0 : index
    %29 = vector.load %arg6[%c0_13, %c0_14] : memref<32x32xbf16, #tpu.memory_space<vmem>>, vector<32x32xbf16>
    %cst_15 = arith.constant dense<0.000000e+00> : vector<8x32xf32>
    %30 = tpu.matmul %26, %29, %cst_15 {dimension_numbers = #tpu.dot_dimension_numbers<[1], [0], [0], [1], [0, 0, 1, 1], [], []>} : vector<8x32xbf16>, vector<32x32xbf16>, vector<8x32xf32> -> vector<8x32xf32>
    %31 = arith.mulf %28, %28 : vector<8x64xf32>
    %cst_16 = arith.constant dense<0.000000e+00> : vector<8xf32>
    %32 = vector.multi_reduction <add>, %31, %cst_16 [1] : vector<8x64xf32> to vector<8xf32>
    %33 = vector.shape_cast %32 : vector<8xf32> to vector<8x1xf32>
    %cst_17 = arith.constant 6.400000e+01 : f32
    %34 = vector.broadcast %cst_17 : f32 to vector<8x1xf32>
    %35 = arith.divf %33, %34 : vector<8x1xf32>
    %cst_18 = arith.constant 9.99999997E-7 : f32
    %36 = vector.broadcast %cst_18 : f32 to vector<8x1xf32>
    %37 = arith.addf %35, %36 : vector<8x1xf32>
    %38 = math.rsqrt %37 : vector<8x1xf32>
    %39 = vector.broadcast %38 : vector<8x1xf32> to vector<8x64xf32>
    %40 = arith.mulf %28, %39 : vector<8x64xf32>
    %c0_19 = arith.constant 0 : index
    %c0_20 = arith.constant 0 : index
    %41 = vector.load %arg7[%c0_19, %c0_20] : memref<1x64xf32, #tpu.memory_space<vmem>>, vector<1x64xf32>
    %42 = vector.broadcast %41 : vector<1x64xf32> to vector<8x64xf32>
    %43 = arith.mulf %40, %42 : vector<8x64xf32>
    %44 = vector.extract_strided_slice %43 {offsets = [0, 0], sizes = [8, 32], strides = [1, 1]} : vector<8x64xf32> to vector<8x32xf32>
    %45 = arith.truncf %44 : vector<8x32xf32> to vector<8x32xbf16>
    %46 = vector.extract_strided_slice %43 {offsets = [0, 32], sizes = [8, 32], strides = [1, 1]} : vector<8x64xf32> to vector<8x32xf32>
    %47 = arith.truncf %46 : vector<8x32xf32> to vector<8x32xbf16>
    %48 = arith.truncf %30 : vector<8x32xf32> to vector<8x32xbf16>
    %c0_21 = arith.constant 0 : index
    %c0_22 = arith.constant 0 : index
    %49 = vector.load %arg8[%c0_21, %c0_22] : memref<32x32xbf16, #tpu.memory_space<vmem>>, vector<32x32xbf16>
    %cst_23 = arith.constant dense<0.000000e+00> : vector<8x32xf32>
    %50 = tpu.matmul %45, %49, %cst_23 {dimension_numbers = #tpu.dot_dimension_numbers<[1], [0], [0], [1], [0, 0, 1, 1], [], []>} : vector<8x32xbf16>, vector<32x32xbf16>, vector<8x32xf32> -> vector<8x32xf32>
    %c0_24 = arith.constant 0 : index
    %c0_25 = arith.constant 0 : index
    %51 = vector.load %arg11[%c0_24, %c0_25] : memref<1x32xf32, #tpu.memory_space<vmem>>, vector<1x32xf32>
    %52 = vector.broadcast %51 : vector<1x32xf32> to vector<8x32xf32>
    %53 = arith.addf %50, %52 : vector<8x32xf32>
    %54 = arith.truncf %53 : vector<8x32xf32> to vector<8x32xbf16>
    %c0_26 = arith.constant 0 : index
    %c0_27 = arith.constant 0 : index
    %c0_28 = arith.constant 0 : index
    %55 = vector.load %arg14[%c0_26, %c0_27, %c0_28] : memref<1x8x32xbf16, #tpu.memory_space<vmem>>, vector<1x8x32xbf16>
    %56 = vector.shape_cast %55 : vector<1x8x32xbf16> to vector<8x32xbf16>
    %57 = vector.shape_cast %54 : vector<8x32xbf16> to vector<1x8x32xbf16>
    tpu.vector_store %arg14[%c0_26, %c0_27, %c0_28], %57 {strides = array<i32>} : memref<1x8x32xbf16, #tpu.memory_space<vmem>>, vector<1x8x32xbf16>,
    %c0_29 = arith.constant 0 : index
    %c0_30 = arith.constant 0 : index
    %58 = vector.load %arg9[%c0_29, %c0_30] : memref<32x32xbf16, #tpu.memory_space<vmem>>, vector<32x32xbf16>
    %cst_31 = arith.constant dense<0.000000e+00> : vector<8x32xf32>
    %59 = tpu.matmul %47, %58, %cst_31 {dimension_numbers = #tpu.dot_dimension_numbers<[1], [0], [0], [1], [0, 0, 1, 1], [], []>} : vector<8x32xbf16>, vector<32x32xbf16>, vector<8x32xf32> -> vector<8x32xf32>
    %c0_32 = arith.constant 0 : index
    %c0_33 = arith.constant 0 : index
    %60 = vector.load %arg12[%c0_32, %c0_33] : memref<1x32xf32, #tpu.memory_space<vmem>>, vector<1x32xf32>
    %61 = vector.broadcast %60 : vector<1x32xf32> to vector<8x32xf32>
    %62 = arith.addf %59, %61 : vector<8x32xf32>
    %63 = arith.truncf %62 : vector<8x32xf32> to vector<8x32xbf16>
    %c0_34 = arith.constant 0 : index
    %c0_35 = arith.constant 0 : index
    %c0_36 = arith.constant 0 : index
    %64 = vector.load %arg15[%c0_34, %c0_35, %c0_36] : memref<1x8x32xbf16, #tpu.memory_space<vmem>>, vector<1x8x32xbf16>
    %65 = vector.shape_cast %64 : vector<1x8x32xbf16> to vector<8x32xbf16>
    %66 = vector.shape_cast %63 : vector<8x32xbf16> to vector<1x8x32xbf16>
    tpu.vector_store %arg15[%c0_34, %c0_35, %c0_36], %66 {strides = array<i32>} : memref<1x8x32xbf16, #tpu.memory_space<vmem>>, vector<1x8x32xbf16>,
    %c0_37 = arith.constant 0 : index
    %c0_38 = arith.constant 0 : index
    %67 = vector.load %arg10[%c0_37, %c0_38] : memref<32x32xbf16, #tpu.memory_space<vmem>>, vector<32x32xbf16>
    %cst_39 = arith.constant dense<0.000000e+00> : vector<8x32xf32>
    %68 = tpu.matmul %48, %67, %cst_39 {dimension_numbers = #tpu.dot_dimension_numbers<[1], [0], [0], [1], [0, 0, 1, 1], [], []>} : vector<8x32xbf16>, vector<32x32xbf16>, vector<8x32xf32> -> vector<8x32xf32>
    %c0_40 = arith.constant 0 : index
    %c0_41 = arith.constant 0 : index
    %69 = vector.load %arg13[%c0_40, %c0_41] : memref<1x32xf32, #tpu.memory_space<vmem>>, vector<1x32xf32>
    %70 = vector.broadcast %69 : vector<1x32xf32> to vector<8x32xf32>
    %71 = arith.addf %68, %70 : vector<8x32xf32>
    %72 = arith.truncf %71 : vector<8x32xf32> to vector<8x32xbf16>
    %c0_42 = arith.constant 0 : index
    %c0_43 = arith.constant 0 : index
    %c0_44 = arith.constant 0 : index
    %73 = vector.load %arg16[%c0_42, %c0_43, %c0_44] : memref<1x8x32xbf16, #tpu.memory_space<vmem>>, vector<1x8x32xbf16>
    %74 = vector.shape_cast %73 : vector<1x8x32xbf16> to vector<8x32xbf16>
    %75 = vector.shape_cast %72 : vector<8x32xbf16> to vector<1x8x32xbf16>
    tpu.vector_store %arg16[%c0_42, %c0_43, %c0_44], %75 {strides = array<i32>} : memref<1x8x32xbf16, #tpu.memory_space<vmem>>, vector<1x8x32xbf16>,
    return
  }
  func.func @transform_0(%arg0: i32, %arg1: i32) -> (i32, i32, i32) {
    %c0_i32 = arith.constant 0 : i32
    %c0_i32_0 = arith.constant 0 : i32
    return %arg0, %arg1, %c0_i32 : i32, i32, i32
  }
  func.func @transform_1(%arg0: i32, %arg1: i32) -> (i32, i32) {
    %c0_i32 = arith.constant 0 : i32
    %c0_i32_0 = arith.constant 0 : i32
    %c0_i32_1 = arith.constant 0 : i32
    return %c0_i32, %c0_i32_0 : i32, i32
  }
  func.func @transform_2(%arg0: i32, %arg1: i32) -> (i32, i32) {
    %c0_i32 = arith.constant 0 : i32
    %c0_i32_0 = arith.constant 0 : i32
    %c0_i32_1 = arith.constant 0 : i32
    return %c0_i32, %c0_i32_0 : i32, i32
  }
  func.func @transform_3(%arg0: i32, %arg1: i32) -> (i32, i32) {
    %c0_i32 = arith.constant 0 : i32
    %c0_i32_0 = arith.constant 0 : i32
    %c0_i32_1 = arith.constant 0 : i32
    return %c0_i32, %c0_i32_0 : i32, i32
  }
  func.func @transform_4(%arg0: i32, %arg1: i32) -> (i32, i32) {
    %c0_i32 = arith.constant 0 : i32
    %c0_i32_0 = arith.constant 0 : i32
    %c0_i32_1 = arith.constant 0 : i32
    return %c0_i32, %c0_i32_0 : i32, i32
  }
  func.func @transform_5(%arg0: i32, %arg1: i32) -> (i32, i32) {
    %c0_i32 = arith.constant 0 : i32
    %c0_i32_0 = arith.constant 0 : i32
    %c0_i32_1 = arith.constant 0 : i32
    return %c0_i32, %c0_i32_0 : i32, i32
  }
  func.func @transform_6(%arg0: i32, %arg1: i32) -> (i32, i32) {
    %c0_i32 = arith.constant 0 : i32
    %c0_i32_0 = arith.constant 0 : i32
    %c0_i32_1 = arith.constant 0 : i32
    return %c0_i32, %c0_i32_0 : i32, i32
  }
  func.func @transform_7(%arg0: i32, %arg1: i32) -> (i32, i32) {
    %c0_i32 = arith.constant 0 : i32
    %c0_i32_0 = arith.constant 0 : i32
    %c0_i32_1 = arith.constant 0 : i32
    return %c0_i32, %c0_i32_0 : i32, i32
  }
  func.func @transform_8(%arg0: i32, %arg1: i32) -> (i32, i32) {
    %c0_i32 = arith.constant 0 : i32
    %c0_i32_0 = arith.constant 0 : i32
    %c0_i32_1 = arith.constant 0 : i32
    return %c0_i32, %c0_i32_0 : i32, i32
  }
  func.func @transform_9(%arg0: i32, %arg1: i32) -> (i32, i32) {
    %c0_i32 = arith.constant 0 : i32
    %c0_i32_0 = arith.constant 0 : i32
    %c0_i32_1 = arith.constant 0 : i32
    return %c0_i32, %c0_i32_0 : i32, i32
  }
  func.func @transform_10(%arg0: i32, %arg1: i32) -> (i32, i32) {
    %c0_i32 = arith.constant 0 : i32
    %c0_i32_0 = arith.constant 0 : i32
    %c0_i32_1 = arith.constant 0 : i32
    return %c0_i32, %c0_i32_0 : i32, i32
  }
  func.func @transform_11(%arg0: i32, %arg1: i32) -> (i32, i32) {
    %c0_i32 = arith.constant 0 : i32
    %c0_i32_0 = arith.constant 0 : i32
    %c0_i32_1 = arith.constant 0 : i32
    return %c0_i32, %c0_i32_0 : i32, i32
  }
  func.func @transform_12(%arg0: i32, %arg1: i32) -> (i32, i32, i32) {
    %c0_i32 = arith.constant 0 : i32
    %c0_i32_0 = arith.constant 0 : i32
    return %arg0, %arg1, %c0_i32 : i32, i32, i32
  }
  func.func @transform_13(%arg0: i32, %arg1: i32) -> (i32, i32, i32) {
    %c0_i32 = arith.constant 0 : i32
    %c0_i32_0 = arith.constant 0 : i32
    return %arg0, %arg1, %c0_i32 : i32, i32, i32
  }
  func.func @transform_14(%arg0: i32, %arg1: i32) -> (i32, i32, i32) {
    %c0_i32 = arith.constant 0 : i32
    %c0_i32_0 = arith.constant 0 : i32
    return %arg0, %arg1, %c0_i32 : i32, i32, i32
  }
}

module attributes {stable_mosaic.version = 11 : i64} {
  func.func @_flash_attn_kernel(%arg0: i32, %arg1: i32, %arg2: i32, %arg3: memref<1x4x8x8xbf16, #tpu.memory_space<vmem>>, %arg4: memref<1x4x8x8xbf16, #tpu.memory_space<vmem>>, %arg5: memref<1x4x8x8xbf16, #tpu.memory_space<vmem>>, %arg6: memref<1x4x8x8xbf16, #tpu.memory_space<vmem>>, %arg7: memref<4x8x1xf32, #tpu.memory_space<vmem>>, %arg8: memref<4x8x1xf32, #tpu.memory_space<vmem>>, %arg9: memref<4x8x8xf32, #tpu.memory_space<vmem>>) attributes {dimension_semantics = [#tpu.dimension_semantics<parallel>, #tpu.dimension_semantics<parallel>, #tpu.dimension_semantics<arbitrary>], iteration_bounds = array<i64: 2, 1, 1>, scalar_prefetch = 0 : i64, scratch_operands = 3 : i64, tpu.core_type = #tpu.core_type<tc>, window_params = [{transform_indices = @transform_0, window_bounds = array<i64: 1, 4, 8, 8>}, {transform_indices = @transform_1, window_bounds = array<i64: 1, 4, 8, 8>}, {transform_indices = @transform_2, window_bounds = array<i64: 1, 4, 8, 8>}, {transform_indices = @transform_3, window_bounds = array<i64: 1, 4, 8, 8>}]} {
    %c0_i32 = arith.constant 0 : i32
    %0 = arith.cmpi eq, %arg2, %c0_i32 : i32
    %1 = arith.extui %0 : i1 to i32
    %c0_i32_0 = arith.constant 0 : i32
    %2 = arith.cmpi ne, %1, %c0_i32_0 : i32
    scf.if %2 {
      %cst_36 = arith.constant 0xFF800000 : f32
      %38 = vector.broadcast %cst_36 : f32 to vector<4x8x1xf32>
      %c0_37 = arith.constant 0 : index
      %c0_38 = arith.constant 0 : index
      %c0_39 = arith.constant 0 : index
      %39 = vector.load %arg7[%c0_37, %c0_38, %c0_39] : memref<4x8x1xf32, #tpu.memory_space<vmem>>, vector<4x8x1xf32>
      tpu.vector_store %arg7[%c0_37, %c0_38, %c0_39], %38 {strides = array<i32>} : memref<4x8x1xf32, #tpu.memory_space<vmem>>, vector<4x8x1xf32>,
      %cst_40 = arith.constant 0.000000e+00 : f32
      %40 = vector.broadcast %cst_40 : f32 to vector<4x8x1xf32>
      %c0_41 = arith.constant 0 : index
      %c0_42 = arith.constant 0 : index
      %c0_43 = arith.constant 0 : index
      %41 = vector.load %arg8[%c0_41, %c0_42, %c0_43] : memref<4x8x1xf32, #tpu.memory_space<vmem>>, vector<4x8x1xf32>
      tpu.vector_store %arg8[%c0_41, %c0_42, %c0_43], %40 {strides = array<i32>} : memref<4x8x1xf32, #tpu.memory_space<vmem>>, vector<4x8x1xf32>,
      %cst_44 = arith.constant 0.000000e+00 : f32
      %42 = vector.broadcast %cst_44 : f32 to vector<4x8x8xf32>
      %c0_45 = arith.constant 0 : index
      %c0_46 = arith.constant 0 : index
      %c0_47 = arith.constant 0 : index
      %43 = vector.load %arg9[%c0_45, %c0_46, %c0_47] : memref<4x8x8xf32, #tpu.memory_space<vmem>>, vector<4x8x8xf32>
      tpu.vector_store %arg9[%c0_45, %c0_46, %c0_47], %42 {strides = array<i32>} : memref<4x8x8xf32, #tpu.memory_space<vmem>>, vector<4x8x8xf32>,
    } else {
    }
    %c0 = arith.constant 0 : index
    %c0_1 = arith.constant 0 : index
    %c0_2 = arith.constant 0 : index
    %c0_3 = arith.constant 0 : index
    %3 = vector.load %arg3[%c0, %c0_1, %c0_2, %c0_3] : memref<1x4x8x8xbf16, #tpu.memory_space<vmem>>, vector<1x4x8x8xbf16>
    %4 = vector.shape_cast %3 : vector<1x4x8x8xbf16> to vector<4x8x8xbf16>
    %c0_4 = arith.constant 0 : index
    %c0_5 = arith.constant 0 : index
    %c0_6 = arith.constant 0 : index
    %c0_7 = arith.constant 0 : index
    %5 = vector.load %arg4[%c0_4, %c0_5, %c0_6, %c0_7] : memref<1x4x8x8xbf16, #tpu.memory_space<vmem>>, vector<1x4x8x8xbf16>
    %6 = vector.shape_cast %5 : vector<1x4x8x8xbf16> to vector<4x8x8xbf16>
    %c0_8 = arith.constant 0 : index
    %c0_9 = arith.constant 0 : index
    %c0_10 = arith.constant 0 : index
    %c0_11 = arith.constant 0 : index
    %7 = vector.load %arg5[%c0_8, %c0_9, %c0_10, %c0_11] : memref<1x4x8x8xbf16, #tpu.memory_space<vmem>>, vector<1x4x8x8xbf16>
    %8 = vector.shape_cast %7 : vector<1x4x8x8xbf16> to vector<4x8x8xbf16>
    "tpu.trace_start"() <{level = 10 : i32, message = "hqd,hkd->hqk"}> : () -> ()
    %cst = arith.constant dense<0.000000e+00> : vector<4x8x8xf32>
    %9 = tpu.matmul %4, %6, %cst {dimension_numbers = #tpu.dot_dimension_numbers<[2], [2], [1], [1], [0, 0, 0, 1, 1, 1], [0], [0]>} : vector<4x8x8xbf16>, vector<4x8x8xbf16>, vector<4x8x8xf32> -> vector<4x8x8xf32>
    "tpu.trace_stop"() : () -> ()
    %cst_12 = arith.constant 0.353553385 : f32
    %10 = vector.broadcast %cst_12 : f32 to vector<4x8x8xf32>
    %11 = arith.mulf %9, %10 : vector<4x8x8xf32>
    %c0_13 = arith.constant 0 : index
    %c0_14 = arith.constant 0 : index
    %c0_15 = arith.constant 0 : index
    %12 = vector.load %arg7[%c0_13, %c0_14, %c0_15] : memref<4x8x1xf32, #tpu.memory_space<vmem>>, vector<4x8x1xf32>
    %cst_16 = arith.constant dense<0xFF800000> : vector<4x8xf32>
    %13 = vector.multi_reduction <maximumf>, %11, %cst_16 [2] : vector<4x8x8xf32> to vector<4x8xf32>
    %14 = vector.shape_cast %13 : vector<4x8xf32> to vector<4x8x1xf32>
    %15 = arith.maximumf %12, %14 : vector<4x8x1xf32>
    %16 = arith.subf %12, %15 : vector<4x8x1xf32>
    %17 = math.exp %16 : vector<4x8x1xf32>
    %18 = vector.broadcast %15 : vector<4x8x1xf32> to vector<4x8x8xf32>
    %19 = arith.subf %11, %18 : vector<4x8x8xf32>
    %20 = math.exp %19 : vector<4x8x8xf32>
    %c0_17 = arith.constant 0 : index
    %c0_18 = arith.constant 0 : index
    %c0_19 = arith.constant 0 : index
    %21 = vector.load %arg8[%c0_17, %c0_18, %c0_19] : memref<4x8x1xf32, #tpu.memory_space<vmem>>, vector<4x8x1xf32>
    %22 = arith.mulf %17, %21 : vector<4x8x1xf32>
    %cst_20 = arith.constant dense<0.000000e+00> : vector<4x8xf32>
    %23 = vector.multi_reduction <add>, %20, %cst_20 [2] : vector<4x8x8xf32> to vector<4x8xf32>
    %24 = vector.shape_cast %23 : vector<4x8xf32> to vector<4x8x1xf32>
    %25 = arith.addf %22, %24 : vector<4x8x1xf32>
    %c0_21 = arith.constant 0 : index
    %c0_22 = arith.constant 0 : index
    %c0_23 = arith.constant 0 : index
    %26 = vector.load %arg8[%c0_21, %c0_22, %c0_23] : memref<4x8x1xf32, #tpu.memory_space<vmem>>, vector<4x8x1xf32>
    tpu.vector_store %arg8[%c0_21, %c0_22, %c0_23], %25 {strides = array<i32>} : memref<4x8x1xf32, #tpu.memory_space<vmem>>, vector<4x8x1xf32>,
    %c0_24 = arith.constant 0 : index
    %c0_25 = arith.constant 0 : index
    %c0_26 = arith.constant 0 : index
    %27 = vector.load %arg9[%c0_24, %c0_25, %c0_26] : memref<4x8x8xf32, #tpu.memory_space<vmem>>, vector<4x8x8xf32>
    %28 = vector.broadcast %17 : vector<4x8x1xf32> to vector<4x8x8xf32>
    %29 = arith.mulf %28, %27 : vector<4x8x8xf32>
    %30 = arith.truncf %20 : vector<4x8x8xf32> to vector<4x8x8xbf16>
    "tpu.trace_start"() <{level = 10 : i32, message = "hqk,hkd->hqd"}> : () -> ()
    %cst_27 = arith.constant dense<0.000000e+00> : vector<4x8x8xf32>
    %31 = tpu.matmul %30, %8, %cst_27 {dimension_numbers = #tpu.dot_dimension_numbers<[2], [1], [1], [2], [0, 0, 0, 1, 1, 2], [0], [0]>} : vector<4x8x8xbf16>, vector<4x8x8xbf16>, vector<4x8x8xf32> -> vector<4x8x8xf32>
    "tpu.trace_stop"() : () -> ()
    %32 = arith.addf %29, %31 : vector<4x8x8xf32>
    %c0_28 = arith.constant 0 : index
    %c0_29 = arith.constant 0 : index
    %c0_30 = arith.constant 0 : index
    %33 = vector.load %arg9[%c0_28, %c0_29, %c0_30] : memref<4x8x8xf32, #tpu.memory_space<vmem>>, vector<4x8x8xf32>
    tpu.vector_store %arg9[%c0_28, %c0_29, %c0_30], %32 {strides = array<i32>} : memref<4x8x8xf32, #tpu.memory_space<vmem>>, vector<4x8x8xf32>,
    %c0_31 = arith.constant 0 : index
    %c0_32 = arith.constant 0 : index
    %c0_33 = arith.constant 0 : index
    %34 = vector.load %arg7[%c0_31, %c0_32, %c0_33] : memref<4x8x1xf32, #tpu.memory_space<vmem>>, vector<4x8x1xf32>
    tpu.vector_store %arg7[%c0_31, %c0_32, %c0_33], %15 {strides = array<i32>} : memref<4x8x1xf32, #tpu.memory_space<vmem>>, vector<4x8x1xf32>,
    %c0_i32_34 = arith.constant 0 : i32
    %35 = arith.cmpi eq, %arg2, %c0_i32_34 : i32
    %36 = arith.extui %35 : i1 to i32
    %c0_i32_35 = arith.constant 0 : i32
    %37 = arith.cmpi ne, %36, %c0_i32_35 : i32
    scf.if %37 {
      %c0_36 = arith.constant 0 : index
      %c0_37 = arith.constant 0 : index
      %c0_38 = arith.constant 0 : index
      %38 = vector.load %arg8[%c0_36, %c0_37, %c0_38] : memref<4x8x1xf32, #tpu.memory_space<vmem>>, vector<4x8x1xf32>
      %39 = tpu.reciprocal %38 {approx = true} : vector<4x8x1xf32> -> vector<4x8x1xf32>
      %c0_39 = arith.constant 0 : index
      %c0_40 = arith.constant 0 : index
      %c0_41 = arith.constant 0 : index
      %40 = vector.load %arg9[%c0_39, %c0_40, %c0_41] : memref<4x8x8xf32, #tpu.memory_space<vmem>>, vector<4x8x8xf32>
      %41 = vector.broadcast %39 : vector<4x8x1xf32> to vector<4x8x8xf32>
      %42 = arith.mulf %40, %41 : vector<4x8x8xf32>
      %43 = arith.truncf %42 : vector<4x8x8xf32> to vector<4x8x8xbf16>
      %c0_42 = arith.constant 0 : index
      %c0_43 = arith.constant 0 : index
      %c0_44 = arith.constant 0 : index
      %c0_45 = arith.constant 0 : index
      %44 = vector.load %arg6[%c0_42, %c0_43, %c0_44, %c0_45] : memref<1x4x8x8xbf16, #tpu.memory_space<vmem>>, vector<1x4x8x8xbf16>
      %45 = vector.shape_cast %44 : vector<1x4x8x8xbf16> to vector<4x8x8xbf16>
      %46 = vector.shape_cast %43 : vector<4x8x8xbf16> to vector<1x4x8x8xbf16>
      tpu.vector_store %arg6[%c0_42, %c0_43, %c0_44, %c0_45], %46 {strides = array<i32>} : memref<1x4x8x8xbf16, #tpu.memory_space<vmem>>, vector<1x4x8x8xbf16>,
    } else {
    }
    return
  }
  func.func @transform_0(%arg0: i32, %arg1: i32, %arg2: i32) -> (i32, i32, i32, i32) {
    %c0_i32 = arith.constant 0 : i32
    %c0_i32_0 = arith.constant 0 : i32
    %c0_i32_1 = arith.constant 0 : i32
    return %arg0, %c0_i32, %arg1, %c0_i32_0 : i32, i32, i32, i32
  }
  func.func @transform_1(%arg0: i32, %arg1: i32, %arg2: i32) -> (i32, i32, i32, i32) {
    %c0_i32 = arith.constant 0 : i32
    %c0_i32_0 = arith.constant 0 : i32
    %c0_i32_1 = arith.constant 0 : i32
    return %arg0, %c0_i32, %arg2, %c0_i32_0 : i32, i32, i32, i32
  }
  func.func @transform_2(%arg0: i32, %arg1: i32, %arg2: i32) -> (i32, i32, i32, i32) {
    %c0_i32 = arith.constant 0 : i32
    %c0_i32_0 = arith.constant 0 : i32
    %c0_i32_1 = arith.constant 0 : i32
    return %arg0, %c0_i32, %arg2, %c0_i32_0 : i32, i32, i32, i32
  }
  func.func @transform_3(%arg0: i32, %arg1: i32, %arg2: i32) -> (i32, i32, i32, i32) {
    %c0_i32 = arith.constant 0 : i32
    %c0_i32_0 = arith.constant 0 : i32
    %c0_i32_1 = arith.constant 0 : i32
    return %arg0, %c0_i32, %arg1, %c0_i32_0 : i32, i32, i32, i32
  }
}

module attributes {stable_mosaic.version = 11 : i64} {
  func.func @_out_mlp_kernel(%arg0: i32, %arg1: i32, %arg2: memref<1x8x32xbf16, #tpu.memory_space<vmem>>, %arg3: memref<1x8x32xf32, #tpu.memory_space<vmem>>, %arg4: memref<32x32xbf16, #tpu.memory_space<vmem>>, %arg5: memref<1x32xf32, #tpu.memory_space<vmem>>, %arg6: memref<1x32xf32, #tpu.memory_space<vmem>>, %arg7: memref<1x32xf32, #tpu.memory_space<vmem>>, %arg8: memref<32x128xbf16, #tpu.memory_space<vmem>>, %arg9: memref<1x128xf32, #tpu.memory_space<vmem>>, %arg10: memref<128x32xbf16, #tpu.memory_space<vmem>>, %arg11: memref<1x32xf32, #tpu.memory_space<vmem>>, %arg12: memref<1x8x32xf32, #tpu.memory_space<vmem>>) attributes {dimension_semantics = [#tpu.dimension_semantics<parallel>, #tpu.dimension_semantics<parallel>], iteration_bounds = array<i64: 2, 1>, scalar_prefetch = 0 : i64, scratch_operands = 0 : i64, tpu.core_type = #tpu.core_type<tc>, window_params = [{transform_indices = @transform_0, window_bounds = array<i64: 1, 8, 32>}, {transform_indices = @transform_1, window_bounds = array<i64: 1, 8, 32>}, {pipeline_mode = #tpu.pipeline_mode<synchronous>, transform_indices = @transform_2, window_bounds = array<i64: 32, 32>}, {pipeline_mode = #tpu.pipeline_mode<synchronous>, transform_indices = @transform_3, window_bounds = array<i64: 1, 32>}, {pipeline_mode = #tpu.pipeline_mode<synchronous>, transform_indices = @transform_4, window_bounds = array<i64: 1, 32>}, {pipeline_mode = #tpu.pipeline_mode<synchronous>, transform_indices = @transform_5, window_bounds = array<i64: 1, 32>}, {pipeline_mode = #tpu.pipeline_mode<synchronous>, transform_indices = @transform_6, window_bounds = array<i64: 32, 128>}, {pipeline_mode = #tpu.pipeline_mode<synchronous>, transform_indices = @transform_7, window_bounds = array<i64: 1, 128>}, {pipeline_mode = #tpu.pipeline_mode<synchronous>, transform_indices = @transform_8, window_bounds = array<i64: 128, 32>}, {pipeline_mode = #tpu.pipeline_mode<synchronous>, transform_indices = @transform_9, window_bounds = array<i64: 1, 32>}, {transform_indices = @transform_10, window_bounds = array<i64: 1, 8, 32>}]} {
    %c0 = arith.constant 0 : index
    %c0_0 = arith.constant 0 : index
    %c0_1 = arith.constant 0 : index
    %0 = vector.load %arg2[%c0, %c0_0, %c0_1] : memref<1x8x32xbf16, #tpu.memory_space<vmem>>, vector<1x8x32xbf16>
    %1 = vector.shape_cast %0 : vector<1x8x32xbf16> to vector<8x32xbf16>
    %c0_2 = arith.constant 0 : index
    %c0_3 = arith.constant 0 : index
    %2 = vector.load %arg4[%c0_2, %c0_3] : memref<32x32xbf16, #tpu.memory_space<vmem>>, vector<32x32xbf16>
    %cst = arith.constant dense<0.000000e+00> : vector<8x32xf32>
    %3 = tpu.matmul %1, %2, %cst {dimension_numbers = #tpu.dot_dimension_numbers<[1], [0], [0], [1], [0, 0, 1, 1], [], []>} : vector<8x32xbf16>, vector<32x32xbf16>, vector<8x32xf32> -> vector<8x32xf32>
    %c0_4 = arith.constant 0 : index
    %c0_5 = arith.constant 0 : index
    %4 = vector.load %arg5[%c0_4, %c0_5] : memref<1x32xf32, #tpu.memory_space<vmem>>, vector<1x32xf32>
    %5 = vector.broadcast %4 : vector<1x32xf32> to vector<8x32xf32>
    %6 = arith.addf %3, %5 : vector<8x32xf32>
    %c0_6 = arith.constant 0 : index
    %c0_7 = arith.constant 0 : index
    %c0_8 = arith.constant 0 : index
    %7 = vector.load %arg3[%c0_6, %c0_7, %c0_8] : memref<1x8x32xf32, #tpu.memory_space<vmem>>, vector<1x8x32xf32>
    %8 = vector.shape_cast %7 : vector<1x8x32xf32> to vector<8x32xf32>
    %9 = arith.addf %6, %8 : vector<8x32xf32>
    %c0_9 = arith.constant 0 : index
    %c0_10 = arith.constant 0 : index
    %10 = vector.load %arg6[%c0_9, %c0_10] : memref<1x32xf32, #tpu.memory_space<vmem>>, vector<1x32xf32>
    %c0_11 = arith.constant 0 : index
    %c0_12 = arith.constant 0 : index
    %11 = vector.load %arg7[%c0_11, %c0_12] : memref<1x32xf32, #tpu.memory_space<vmem>>, vector<1x32xf32>
    %cst_13 = arith.constant dense<0.000000e+00> : vector<8xf32>
    %12 = vector.multi_reduction <add>, %9, %cst_13 [1] : vector<8x32xf32> to vector<8xf32>
    %13 = vector.shape_cast %12 : vector<8xf32> to vector<8x1xf32>
    %cst_14 = arith.constant 3.200000e+01 : f32
    %14 = vector.broadcast %cst_14 : f32 to vector<8x1xf32>
    %15 = arith.divf %13, %14 : vector<8x1xf32>
    %16 = vector.broadcast %15 : vector<8x1xf32> to vector<8x32xf32>
    %17 = arith.subf %9, %16 : vector<8x32xf32>
    %18 = arith.mulf %17, %17 : vector<8x32xf32>
    %cst_15 = arith.constant dense<0.000000e+00> : vector<8xf32>
    %19 = vector.multi_reduction <add>, %18, %cst_15 [1] : vector<8x32xf32> to vector<8xf32>
    %20 = vector.shape_cast %19 : vector<8xf32> to vector<8x1xf32>
    %cst_16 = arith.constant 3.200000e+01 : f32
    %21 = vector.broadcast %cst_16 : f32 to vector<8x1xf32>
    %22 = arith.divf %20, %21 : vector<8x1xf32>
    %23 = vector.broadcast %15 : vector<8x1xf32> to vector<8x32xf32>
    %24 = arith.subf %9, %23 : vector<8x32xf32>
    %cst_17 = arith.constant 9.99999974E-6 : f32
    %25 = vector.broadcast %cst_17 : f32 to vector<8x1xf32>
    %26 = arith.addf %22, %25 : vector<8x1xf32>
    %27 = math.rsqrt %26 : vector<8x1xf32>
    %28 = vector.broadcast %27 : vector<8x1xf32> to vector<8x32xf32>
    %29 = arith.mulf %24, %28 : vector<8x32xf32>
    %30 = vector.broadcast %10 : vector<1x32xf32> to vector<8x32xf32>
    %31 = arith.mulf %29, %30 : vector<8x32xf32>
    %32 = vector.broadcast %11 : vector<1x32xf32> to vector<8x32xf32>
    %33 = arith.addf %31, %32 : vector<8x32xf32>
    %34 = arith.truncf %33 : vector<8x32xf32> to vector<8x32xbf16>
    %c0_18 = arith.constant 0 : index
    %c0_19 = arith.constant 0 : index
    %35 = vector.load %arg8[%c0_18, %c0_19] : memref<32x128xbf16, #tpu.memory_space<vmem>>, vector<32x128xbf16>
    %cst_20 = arith.constant dense<0.000000e+00> : vector<8x128xf32>
    %36 = tpu.matmul %34, %35, %cst_20 {dimension_numbers = #tpu.dot_dimension_numbers<[1], [0], [0], [1], [0, 0, 1, 1], [], []>} : vector<8x32xbf16>, vector<32x128xbf16>, vector<8x128xf32> -> vector<8x128xf32>
    %c0_21 = arith.constant 0 : index
    %c0_22 = arith.constant 0 : index
    %37 = vector.load %arg9[%c0_21, %c0_22] : memref<1x128xf32, #tpu.memory_space<vmem>>, vector<1x128xf32>
    %38 = vector.broadcast %37 : vector<1x128xf32> to vector<8x128xf32>
    %39 = arith.addf %36, %38 : vector<8x128xf32>
    %40 = arith.mulf %39, %39 : vector<8x128xf32>
    %41 = arith.mulf %39, %40 : vector<8x128xf32>
    %cst_23 = arith.constant 4.471500e-02 : f32
    %42 = vector.broadcast %cst_23 : f32 to vector<8x128xf32>
    %43 = arith.mulf %42, %41 : vector<8x128xf32>
    %44 = arith.addf %39, %43 : vector<8x128xf32>
    %cst_24 = arith.constant 0.797884583 : f32
    %45 = vector.broadcast %cst_24 : f32 to vector<8x128xf32>
    %46 = arith.mulf %45, %44 : vector<8x128xf32>
    %47 = math.tanh %46 : vector<8x128xf32>
    %cst_25 = arith.constant 1.000000e+00 : f32
    %48 = vector.broadcast %cst_25 : f32 to vector<8x128xf32>
    %49 = arith.addf %48, %47 : vector<8x128xf32>
    %cst_26 = arith.constant 5.000000e-01 : f32
    %50 = vector.broadcast %cst_26 : f32 to vector<8x128xf32>
    %51 = arith.mulf %50, %49 : vector<8x128xf32>
    %52 = arith.mulf %39, %51 : vector<8x128xf32>
    %53 = arith.truncf %52 : vector<8x128xf32> to vector<8x128xbf16>
    %c0_27 = arith.constant 0 : index
    %c0_28 = arith.constant 0 : index
    %54 = vector.load %arg10[%c0_27, %c0_28] : memref<128x32xbf16, #tpu.memory_space<vmem>>, vector<128x32xbf16>
    %cst_29 = arith.constant dense<0.000000e+00> : vector<8x32xf32>
    %55 = tpu.matmul %53, %54, %cst_29 {dimension_numbers = #tpu.dot_dimension_numbers<[1], [0], [0], [1], [0, 0, 1, 1], [], []>} : vector<8x128xbf16>, vector<128x32xbf16>, vector<8x32xf32> -> vector<8x32xf32>
    %c0_30 = arith.constant 0 : index
    %c0_31 = arith.constant 0 : index
    %56 = vector.load %arg11[%c0_30, %c0_31] : memref<1x32xf32, #tpu.memory_space<vmem>>, vector<1x32xf32>
    %57 = vector.broadcast %56 : vector<1x32xf32> to vector<8x32xf32>
    %58 = arith.addf %55, %57 : vector<8x32xf32>
    %59 = arith.addf %58, %9 : vector<8x32xf32>
    %c0_32 = arith.constant 0 : index
    %c0_33 = arith.constant 0 : index
    %c0_34 = arith.constant 0 : index
    %60 = vector.load %arg12[%c0_32, %c0_33, %c0_34] : memref<1x8x32xf32, #tpu.memory_space<vmem>>, vector<1x8x32xf32>
    %61 = vector.shape_cast %60 : vector<1x8x32xf32> to vector<8x32xf32>
    %62 = vector.shape_cast %59 : vector<8x32xf32> to vector<1x8x32xf32>
    tpu.vector_store %arg12[%c0_32, %c0_33, %c0_34], %62 {strides = array<i32>} : memref<1x8x32xf32, #tpu.memory_space<vmem>>, vector<1x8x32xf32>,
    return
  }
  func.func @transform_0(%arg0: i32, %arg1: i32) -> (i32, i32, i32) {
    %c0_i32 = arith.constant 0 : i32
    %c0_i32_0 = arith.constant 0 : i32
    return %arg0, %arg1, %c0_i32 : i32, i32, i32
  }
  func.func @transform_1(%arg0: i32, %arg1: i32) -> (i32, i32, i32) {
    %c0_i32 = arith.constant 0 : i32
    %c0_i32_0 = arith.constant 0 : i32
    return %arg0, %arg1, %c0_i32 : i32, i32, i32
  }
  func.func @transform_2(%arg0: i32, %arg1: i32) -> (i32, i32) {
    %c0_i32 = arith.constant 0 : i32
    %c0_i32_0 = arith.constant 0 : i32
    %c0_i32_1 = arith.constant 0 : i32
    return %c0_i32, %c0_i32_0 : i32, i32
  }
  func.func @transform_3(%arg0: i32, %arg1: i32) -> (i32, i32) {
    %c0_i32 = arith.constant 0 : i32
    %c0_i32_0 = arith.constant 0 : i32
    %c0_i32_1 = arith.constant 0 : i32
    return %c0_i32, %c0_i32_0 : i32, i32
  }
  func.func @transform_4(%arg0: i32, %arg1: i32) -> (i32, i32) {
    %c0_i32 = arith.constant 0 : i32
    %c0_i32_0 = arith.constant 0 : i32
    %c0_i32_1 = arith.constant 0 : i32
    return %c0_i32, %c0_i32_0 : i32, i32
  }
  func.func @transform_5(%arg0: i32, %arg1: i32) -> (i32, i32) {
    %c0_i32 = arith.constant 0 : i32
    %c0_i32_0 = arith.constant 0 : i32
    %c0_i32_1 = arith.constant 0 : i32
    return %c0_i32, %c0_i32_0 : i32, i32
  }
  func.func @transform_6(%arg0: i32, %arg1: i32) -> (i32, i32) {
    %c0_i32 = arith.constant 0 : i32
    %c0_i32_0 = arith.constant 0 : i32
    %c0_i32_1 = arith.constant 0 : i32
    return %c0_i32, %c0_i32_0 : i32, i32
  }
  func.func @transform_7(%arg0: i32, %arg1: i32) -> (i32, i32) {
    %c0_i32 = arith.constant 0 : i32
    %c0_i32_0 = arith.constant 0 : i32
    %c0_i32_1 = arith.constant 0 : i32
    return %c0_i32, %c0_i32_0 : i32, i32
  }
  func.func @transform_8(%arg0: i32, %arg1: i32) -> (i32, i32) {
    %c0_i32 = arith.constant 0 : i32
    %c0_i32_0 = arith.constant 0 : i32
    %c0_i32_1 = arith.constant 0 : i32
    return %c0_i32, %c0_i32_0 : i32, i32
  }
  func.func @transform_9(%arg0: i32, %arg1: i32) -> (i32, i32) {
    %c0_i32 = arith.constant 0 : i32
    %c0_i32_0 = arith.constant 0 : i32
    %c0_i32_1 = arith.constant 0 : i32
    return %c0_i32, %c0_i32_0 : i32, i32
  }
  func.func @transform_10(%arg0: i32, %arg1: i32) -> (i32, i32, i32) {
    %c0_i32 = arith.constant 0 : i32
    %c0_i32_0 = arith.constant 0 : i32
    return %arg0, %arg1, %c0_i32 : i32, i32, i32
  }
}

</mosaic_0001>

<bundles_post_ra>
// kernel: transformer_pallas.4
= control target key start
LH: loop header
LB: loop body
LE: loop exit
PB: predicated region body
PF: predicated region fallthrough
CT: control target
= control target key end

     0   :  { %s1176_s12 = smov 0   ;;  %s1178_s13 = smov 0   ;;  %s1355_s0 = inlined_call_operand.vmem [shape: bf16[2,4,8,8], index: 0, kind: input, shape index: {}]   ;;  %s1356_s1 = inlined_call_operand.vmem [shape: bf16[2,4,8,8], index: 1, kind: input, shape index: {}]   ;;  %s1357_s2 = inlined_call_operand.vmem [shape: bf16[2,4,8,8], index: 2, kind: input, shape index: {}]   ;;  %s1358_s3 = inlined_call_operand.vmem [shape: bf16[2,4,8,8], index: 3, kind: output, shape index: {}]  }
   0x1   :  { %s1180_s14 = smov 0  }
   0x2 LB: > { %s32_s15 = sadd.s32 1, %s1146_s13  ;;  %p987_p0 = scmp.ge.s32.totalorder %s1150_s14, 1  ;;  %s1150_s14 = sphi %s1180_s14, %s13_s14   ;;  %s1146_s13 = sphi %s1178_s13, %s1360_s13   ;;  %s1142_s12 = sphi %s1176_s12, %s1359_s12  }
   0x3   : > { %p34_p1 = scmp.ge.s32.totalorder %s32_s15, 2  ;;  %p193_p2 = scmp.lt.s32.totalorder %s1150_s14, 3 }
   0x5   : > { %s1362_s15 = smov (%p34_p1, %s32_s15), 0  ;;  %p194_p3 = pnand %p987_p0, %p193_p2 }
   0x6   : > { %p239_p4 = scmp.lt.s32.totalorder (!%p194_p3), %s1142_s12, 1 }
   0x7   : > { %197 = sbr.rel (%p194_p3) target bundleno = 806 (0x326), region = 32 }
   0xc   : > { %vm285_vm0 = vcmask 64512   ;;  %v1152_v0 = vmov 0.0   ;;  %s1364_s12 = smov (!%p239_p4, %s1142_s12), 1  ;;  %vm1153_vm1 = vmmov 0   ;;  %vm276_vm2 = vcmask 7168  }
   0xd   : > { %1026 = vmatprep.subr.bf16.mxu0 %v1152_v0  ;;  %1032 = vmatprep.subr.bf16.mxu1 %v1152_v0  ;;  %286 = vst.msk [vmem:[#allocation4] sm:$0xff] %vm285_vm0, %v1152_v0  ;;  %287 = vst.msk [vmem:[#allocation4 + $0x8] sm:$0xff] %vm285_vm0, %v1152_v0  ;;  %s1208_s16 = sshll.u32 %s1364_s12, 4  ;;  %v1154_v13 = vmov -inf   ;;  %v1155_v38 = vmov 0   ;;  %vm619_vm3 = vcmask 1043456  }
   0xe   : > { %288 = vst.msk [vmem:[#allocation4 + $0x10] sm:$0xff] %vm285_vm0, %v1152_v0  ;;  %289 = vst.msk [vmem:[#allocation4 + $0x18] sm:$0xff] %vm285_vm0, %v1152_v0  ;;  %1028 = vmatprep.mubr.msk.bf16.mxu0 %vm1153_vm1, %v1152_v0  ;;  %1034 = vmatprep.mubr.msk.bf16.mxu1 %vm1153_vm1, %v1152_v0  ;;  %s254_s19 = scalar_lea.vmem %s1356_s1, %s1208_s16  ;;  %s246_s22 = scalar_lea.vmem %s1355_s0, %s1208_s16  ;;  %vm856_vm4 = vcmask 60416  }
   0xf   : > { %v294_v1 = vld [vmem:[%s254_s19] sm:$0xf]  ;;  %v295_v2 = vld [vmem:[%s254_s19 + $0x4] sm:$0xf]  ;;  %v296_v5 = vld [vmem:[%s254_s19 + $0x8] sm:$0xf]  ;;  %1102 = vset.pattern.permute.xlu0 %v1155_v38  ;;  %1103 = vset.pattern.permute.xlu1 %v1155_v38  ;;  %s262_s25 = scalar_lea.vmem %s1357_s2, %s1208_s16  ;;  %s270_s28 = scalar_lea.vmem %s1358_s3, %s1208_s16 }
  0x10   : > { %v307_v3 = vsel %vm285_vm0, %v294_v1, 0  ;;  %v353_v4 = vsel %vm285_vm0, %v295_v2, 0  ;;  %v297_v6 = vld [vmem:[%s254_s19 + $0xc] sm:$0xf]  ;;  %v290_v7 = vld [vmem:[%s246_s22] sm:$0xf] }
  0x11   : > { %1027 = vmatpush3.bf16.xpose.msra.mxu0 %v307_v3  ;;  %1033 = vmatpush3.bf16.xpose.msra.mxu1 %v353_v4  ;;  %v291_v8 = vld [vmem:[%s246_s22 + $0x4] sm:$0xf]  ;;  %v399_v9 = vsel %vm285_vm0, %v296_v5, 0  ;;  %v445_v10 = vsel %vm285_vm0, %v297_v6, 0  ;;  %v292_v11 = vld [vmem:[%s246_s22 + $0x8] sm:$0xf] }
  0x12   : > { %1038 = vmatprep.subr.bf16.mxu0 %v1152_v0  ;;  %1044 = vmatprep.subr.bf16.mxu1 %v1152_v0  ;;  %v293_v12 = vld [vmem:[%s246_s22 + $0xc] sm:$0xf]  ;;  %277 = vst.msk [vmem:[#allocation2] sm:$0xff] %vm276_vm2, %v1154_v13  ;;  %278 = vst.msk [vmem:[#allocation2 + $0x8] sm:$0xff] %vm276_vm2, %v1154_v13  ;;  %v298_v54 = vld [vmem:[%s262_s25] sm:$0xf] }
  0x13   : > { %279 = vst.msk [vmem:[#allocation2 + $0x10] sm:$0xff] %vm276_vm2, %v1154_v13  ;;  %280 = vst.msk [vmem:[#allocation2 + $0x18] sm:$0xff] %vm276_vm2, %v1154_v13  ;;  %v621_v56 = vsel %vm619_vm3, %v298_v54, 0  ;;  %v299_v57 = vld [vmem:[%s262_s25 + $0x4] sm:$0xf] }
  0x14   : > { %281 = vst.msk [vmem:[#allocation3] sm:$0xff] %vm276_vm2, %v1152_v0  ;;  %282 = vst.msk [vmem:[#allocation3 + $0x8] sm:$0xff] %vm276_vm2, %v1152_v0  ;;  %v667_v58 = vsel %vm619_vm3, %v299_v57, 0  ;;  %v300_v59 = vld [vmem:[%s262_s25 + $0x8] sm:$0xf] }
  0x15   : > { %283 = vst.msk [vmem:[#allocation3 + $0x10] sm:$0xff] %vm276_vm2, %v1152_v0  ;;  %284 = vst.msk [vmem:[#allocation3 + $0x18] sm:$0xff] %vm276_vm2, %v1152_v0  ;;  %v713_v60 = vsel %vm619_vm3, %v300_v59, 0  ;;  %v301_v61 = vld [vmem:[%s262_s25 + $0xc] sm:$0xf] }
  0x16   : > { %v759_v62 = vsel %vm619_vm3, %v301_v61, 0 }
  0x18   : > { %1029 = vmatmul.mubr.msk.bf16.vlgmr.msra.gmra.mxu0 %vm285_vm0, %v290_v7  ;;  %1035 = vmatmul.mubr.msk.bf16.vlgmr.msra.gmra.mxu1 %vm285_vm0, %v291_v8 }
  0x19   : > { %1039 = vmatpush3.bf16.xpose.msra.mxu0 %v399_v9  ;;  %1045 = vmatpush3.bf16.xpose.msra.mxu1 %v445_v10  ;;  %v1263_v39 = vld [vmem:[#allocation2] sm:$0xff]  ;;  %v1268_v42 = vld [vmem:[#allocation2 + $0x8] sm:$0xff] }
  0x1a   : > { %1040 = vmatprep.mubr.msk.bf16.mxu0 %vm1153_vm1, %v1152_v0  ;;  %1046 = vmatprep.mubr.msk.bf16.mxu1 %vm1153_vm1, %v1152_v0  ;;  %v1278_v46 = vld [vmem:[#allocation2 + $0x10] sm:$0xff]  ;;  %v1288_v50 = vld [vmem:[#allocation2 + $0x18] sm:$0xff] }
  0x1b   : > { %1050 = vmatprep.subr.bf16.mxu0 %v1152_v0  ;;  %1056 = vmatprep.subr.bf16.mxu1 %v1152_v0 }
  0x1c   : > { %v557_v38 = vld [vmem:[#allocation3 + $0x10] sm:$0xff] }
  0x20   : > { %1041 = vmatmul.mubr.msk.bf16.vlgmr.msra.gmra.mxu0 %vm285_vm0, %v292_v11  ;;  %1047 = vmatmul.mubr.msk.bf16.vlgmr.msra.gmra.mxu1 %vm285_vm0, %v293_v12 }
  0x21   : > { %1052 = vmatprep.mubr.msk.bf16.mxu0 %vm1153_vm1, %v1152_v0  ;;  %1058 = vmatprep.mubr.msk.bf16.mxu1 %vm1153_vm1, %v1152_v0 }
  0x22   : > { %1051 = vmatpush3.bf16.msra.mxu0 %v621_v56  ;;  %1057 = vmatpush3.bf16.msra.mxu1 %v667_v58  ;;  %v584_v56 = vld [vmem:[#allocation4] sm:$0xff]  ;;  %v585_v58 = vld [vmem:[#allocation4 + $0x8] sm:$0xff] }
  0x23   : > { %1062 = vmatprep.subr.bf16.mxu0 %v1152_v0  ;;  %1068 = vmatprep.subr.bf16.mxu1 %v1152_v0 }
  0xd8   : > { %v343_v14 = vpop.f32.mrf.mxu0  ;;  %v389_v15 = vpop.f32.mrf.mxu1 }
  0xd9   : > { %v1250_v16 = vmul.f32 0.35355338, %v343_v14  ;;  %v1252_v17 = vmul.f32 0.35355338, %v389_v15 }
  0xda   : > { %v1030_v18 = vpop.f32.mrf.mxu0  ;;  %v1036_v19 = vpop.f32.mrf.mxu1 }
  0xdb   : > { %v495_v20 = vsel %vm285_vm0, %v1250_v16, -inf  ;;  %v498_v23 = vsel %vm285_vm0, %v1252_v17, -inf }
  0xdc   : > { %v392_v21 = vpop.f32.mrf.mxu1  ;;  %496 = vmax.xlane.f32.xlu0 %v495_v20  ;;  %v346_v22 = vpop.f32.mrf.mxu0 }
  0xde   : > { %v1031_v24 = vpop.f32.mrf.mxu0  ;;  %v1037_v25 = vpop.f32.mrf.mxu1 }
  0xe0   : > { %v481_v26 = vpop.f32.mrf.mxu1  ;;  %499 = vmax.xlane.f32.xlu0 %v498_v23  ;;  %v435_v27 = vpop.f32.mrf.mxu0 }
  0xe1   : > { %v1258_v28 = vmul.f32 0.35355338, %v481_v26  ;;  %v489_v29 = vmul.f32 0.35355338, %v435_v27 }
  0xe2   : > { %v1042_v30 = vpop.f32.mrf.mxu0  ;;  %v1048_v31 = vpop.f32.mrf.mxu1 }
  0xe3   : > { %v501_v32 = vsel %vm285_vm0, %v489_v29, -inf  ;;  %v504_v35 = vsel %vm285_vm0, %v1258_v28, -inf  ;;  %v555_v31 = vld [vmem:[#allocation3] sm:$0xff] }
  0xe4   : > { %v484_v33 = vpop.f32.mrf.mxu1  ;;  %502 = vmax.xlane.f32.xlu1 %v501_v32  ;;  %v438_v34 = vpop.f32.mrf.mxu0 }
  0xe5   : > { %v556_v34 = vld [vmem:[#allocation3 + $0x8] sm:$0xff] }
  0xe6   : > { %v1043_v36 = vpop.f32.mrf.mxu0  ;;  %v1049_v37 = vpop.f32.mrf.mxu1 }
  0xe8   : > { %505 = vmax.xlane.f32.xlu1 %v504_v35 }
 0x165   : > { %v497_v40 = vpop.xlane.xlu0 %496 }
 0x166   : > { %v1266_v41 = vmax.f32 %v1263_v39, %v497_v40 }
 0x168   : > { %v511_v43 = vsub.f32 %v1263_v39, %v1266_v41  ;;  %809 = vst.msk [vmem:[#allocation2] sm:$0xff] %vm276_vm2, %v1266_v41  ;;  %525 = vperm.xlu0 %1102, %v1266_v41  }
 0x169   : > { %v500_v44 = vpop.xlane.xlu0 %499 }
 0x16a   : > { %v1276_v45 = vmax.f32 %v1268_v42, %v500_v44  ;;  %v515_v23 = vmul.f32 1.442695, %v511_v43 }
 0x16c   : > { %v512_v47 = vsub.f32 %v1268_v42, %v1276_v45  ;;  %810 = vst.msk [vmem:[#allocation2 + $0x8] sm:$0xff] %vm276_vm2, %v1276_v45  ;;  %530 = vperm.xlu1 %1103, %v1276_v45   ;;  %v558_v42 = vld [vmem:[#allocation3 + $0x18] sm:$0xff] }
 0x16d   : > { %v503_v48 = vpop.xlane.xlu1 %502 }
 0x16e   : > { %v1286_v49 = vmax.f32 %v1278_v46, %v503_v48  ;;  %v517_v21 = vmul.f32 1.442695, %v512_v47 }
 0x170   : > { %v513_v51 = vsub.f32 %v1278_v46, %v1286_v49  ;;  %811 = vst.msk [vmem:[#allocation2 + $0x10] sm:$0xff] %vm276_vm2, %v1286_v49  ;;  %535 = vperm.xlu1 %1103, %v1286_v49  }
 0x171   : > { %v506_v52 = vpop.xlane.xlu1 %505 }
 0x172   : > { %v1296_v53 = vmax.f32 %v1288_v50, %v506_v52 }
 0x174   : > { %v514_v55 = vsub.f32 %v1288_v50, %v1296_v53  ;;  %812 = vst.msk [vmem:[#allocation2 + $0x18] sm:$0xff] %vm276_vm2, %v1296_v53  ;;  %540 = vperm.xlu1 %1103, %v1296_v53  }
 0x176   : > { %v521_v26 = vmul.f32 1.442695, %v514_v55 }
 0x1e3   : > { %v526_v63 = vpop.permute.xlu0 %525 }
 0x1e4   : > { %v543_v1 = vsub.f32 %v1250_v16, %v526_v63 }
 0x1e6   : > { %v547_v2 = vmul.f32 1.442695, %v543_v1 }
 0x1e7   : > { %v531_v3 = vpop.permute.xlu1 %530 }
 0x1e8   : > { %1104 = vpow2.f32 %v547_v2  ;;  %v544_v4 = vsub.f32 %v1252_v17, %v531_v3  ;;  %v586_v2 = vld [vmem:[#allocation4 + $0x10] sm:$0xff] }
 0x1ea   : > { %v549_v5 = vmul.f32 1.442695, %v544_v4 }
 0x1eb   : > { %v536_v6 = vpop.permute.xlu1 %535 }
 0x1ec   : > { %1106 = vpow2.f32 %v549_v5  ;;  %v545_v7 = vsub.f32 %v489_v29, %v536_v6 }
 0x1ee   : > { %v551_v8 = vmul.f32 1.442695, %v545_v7 }
 0x1ef   : > { %v541_v9 = vpop.permute.xlu1 %540 }
 0x1f0   : > { %1108 = vpow2.f32 %v551_v8  ;;  %v546_v10 = vsub.f32 %v1258_v28, %v541_v9 }
 0x1f2   : > { %v553_v11 = vmul.f32 1.442695, %v546_v10  ;;  %v587_v10 = vld [vmem:[#allocation4 + $0x18] sm:$0xff] }
 0x1f4   : > { %1110 = vpow2.f32 %v553_v11 }
 0x1f5   : > { %v1105_v12 = vpop.eup %1104  ;;  %1112 = vpow2.f32 %v517_v21 }
 0x1f6   : > { %v563_v13 = vsel %vm285_vm0, %v1105_v12, 0.0  ;;  %v612_v14 = vpack.c.bf16 %v1105_v12, %v1105_v12  ;;  %1114 = vpow2.f32 %v515_v23 }
 0x1f7   : > { %564 = vadd.xlane.f32.xlu1 %v563_v13 }
 0x1f8   : > { %1053 = vmatmul.mubr.msk.bf16.vlgmr.msra.gmra.mxu0 %vm285_vm0, %v612_v14 }
 0x1f9   : > { %v1107_v15 = vpop.eup %1106  ;;  %1063 = vmatpush3.bf16.msra.mxu0 %v713_v60  ;;  %1064 = vmatprep.mubr.msk.bf16.mxu0 %vm1153_vm1, %v1152_v0 }
 0x1fa   : > { %v566_v16 = vsel %vm285_vm0, %v1107_v15, 0.0  ;;  %v613_v17 = vpack.c.bf16 %v1107_v15, %v1107_v15 }
 0x1fb   : > { %567 = vadd.xlane.f32.xlu0 %v566_v16 }
 0x1fc   : > { %1059 = vmatmul.mubr.msk.bf16.vlgmr.msra.gmra.mxu1 %vm285_vm0, %v613_v17 }
 0x1fd   : > { %v1109_v18 = vpop.eup %1108  ;;  %1069 = vmatpush3.bf16.msra.mxu1 %v759_v62  ;;  %1070 = vmatprep.mubr.msk.bf16.mxu1 %vm1153_vm1, %v1152_v0  ;;  %v519_v0 = vmul.f32 1.442695, %v513_v51 }
 0x1fe   : > { %v569_v19 = vsel %vm285_vm0, %v1109_v18, 0.0  ;;  %v614_v20 = vpack.c.bf16 %v1109_v18, %v1109_v18 }
 0x1ff   : > { %570 = vadd.xlane.f32.xlu1 %v569_v19  ;;  %1116 = vpow2.f32 %v519_v0 }
 0x200   : > { %1065 = vmatmul.mubr.msk.bf16.vlgmr.msra.gmra.mxu0 %vm285_vm0, %v614_v20  ;;  %1118 = vpow2.f32 %v521_v26 }
 0x201   : > { %v1111_v22 = vpop.eup %1110 }
 0x202   : > { %v572_v24 = vsel %vm285_vm0, %v1111_v22, 0.0  ;;  %v615_v25 = vpack.c.bf16 %v1111_v22, %v1111_v22  ;;  %v1113_v27 = vpop.eup %1112 }
 0x203   : > { %573 = vadd.xlane.f32.xlu1 %v572_v24  ;;  %v1115_v28 = vpop.eup %1114  ;;  %v560_v36 = vmul.f32 %v1113_v27, %v556_v34 }
 0x204   : > { %1071 = vmatmul.mubr.msk.bf16.vlgmr.msra.gmra.mxu1 %vm285_vm0, %v615_v25  ;;  %v559_v32 = vmul.f32 %v1115_v28, %v555_v31 }
 0x20c   : > { %v1117_v29 = vpop.eup %1116 }
 0x20d   : > { %v1119_v30 = vpop.eup %1118  ;;  %v561_v40 = vmul.f32 %v1117_v29, %v557_v38 }
 0x20e   : > { %v562_v45 = vmul.f32 %v1119_v30, %v558_v42 }
 0x211   : > { %595 = vperm.xlu0 %1102, %v1113_v27  }
 0x214   : > { %590 = vperm.xlu1 %1103, %v1115_v28  }
 0x218   : > { %600 = vperm.xlu1 %1103, %v1117_v29  }
 0x21c   : > { %605 = vperm.xlu1 %1103, %v1119_v30  }
 0x280   : > { %v565_v33 = vpop.xlane.xlu1 %564 }
 0x281   : > { %v575_v35 = vadd.f32 %v565_v33, %v559_v32 }
 0x283   : > { %580 = vst.msk [vmem:[#allocation3] sm:$0xff] %vm276_vm2, %v575_v35 }
 0x284   : > { %v568_v37 = vpop.xlane.xlu0 %567 }
 0x285   : > { %v576_v39 = vadd.f32 %v568_v37, %v560_v36 }
 0x287   : > { %581 = vst.msk [vmem:[#allocation3 + $0x8] sm:$0xff] %vm276_vm2, %v576_v39 }
 0x288   : > { %v571_v41 = vpop.xlane.xlu1 %570 }
 0x289   : > { %v577_v43 = vadd.f32 %v571_v41, %v561_v40 }
 0x28a   : > { %v816_v44 = vld [vmem:[#allocation3] sm:$0xff] }
 0x28b   : > { %582 = vst.msk [vmem:[#allocation3 + $0x10] sm:$0xff] %vm276_vm2, %v577_v43  ;;  %1120 = vrcp.f32 %v816_v44 }
 0x28c   : > { %v574_v46 = vpop.xlane.xlu1 %573  ;;  %v596_v59 = vpop.permute.xlu0 %595 }
 0x28d   : > { %v578_v47 = vadd.f32 %v574_v46, %v562_v45  ;;  %v609_v1 = vmul.f32 %v596_v59, %v585_v58 }
 0x28e   : > { %v817_v48 = vld [vmem:[#allocation3 + $0x8] sm:$0xff] }
 0x28f   : > { %583 = vst.msk [vmem:[#allocation3 + $0x18] sm:$0xff] %vm276_vm2, %v578_v47  ;;  %1122 = vrcp.f32 %v817_v48 }
 0x290   : > { %v591_v55 = vpop.permute.xlu1 %590 }
 0x291   : > { %v608_v57 = vmul.f32 %v591_v55, %v584_v56 }
 0x292   : > { %v818_v49 = vld [vmem:[#allocation3 + $0x10] sm:$0xff] }
 0x293   : > { %1124 = vrcp.f32 %v818_v49 }
 0x294   : > { %v601_v61 = vpop.permute.xlu1 %600 }
 0x295   : > { %v610_v8 = vmul.f32 %v601_v61, %v586_v2 }
 0x296   : > { %v819_v50 = vld [vmem:[#allocation3 + $0x18] sm:$0xff] }
 0x297   : > { %1126 = vrcp.f32 %v819_v50 }
 0x298   : > { %v1121_v51 = vpop.eup %1120  ;;  %v606_v9 = vpop.permute.xlu1 %605 }
 0x299   : > { %830 = vperm.xlu1 %1103, %v1121_v51   ;;  %v611_v16 = vmul.f32 %v606_v9, %v587_v10 }
 0x29c   : > { %v1123_v52 = vpop.eup %1122 }
 0x29d   : > { %835 = vperm.xlu0 %1102, %v1123_v52  }
 0x2a0   : > { %v1125_v53 = vpop.eup %1124 }
 0x2a1   : > { %840 = vperm.xlu1 %1103, %v1125_v53  }
 0x2a4   : > { %v1127_v54 = vpop.eup %1126 }
 0x2a5   : > { %845 = vperm.xlu0 %1102, %v1127_v54  }
 0x2b8   : > { %v657_v60 = vpop.f32.mrf.mxu0 }
 0x2b9   : > { %v801_v62 = vadd.f32 %v657_v60, %v608_v57 }
 0x2ba   : > { %v1054_v63 = vpop.f32.mrf.mxu0 }
 0x2bb   : > { %805 = vst.msk [vmem:[#allocation4] sm:$0xff] %vm285_vm0, %v801_v62 }
 0x2bc   : > { %v660_v3 = vpop.f32.mrf.mxu0  ;;  %v703_v4 = vpop.f32.mrf.mxu1 }
 0x2bd   : > { %v802_v5 = vadd.f32 %v703_v4, %v609_v1 }
 0x2be   : > { %v1055_v6 = vpop.f32.mrf.mxu0  ;;  %v1060_v7 = vpop.f32.mrf.mxu1 }
 0x2bf   : > { %806 = vst.msk [vmem:[#allocation4 + $0x8] sm:$0xff] %vm285_vm0, %v802_v5 }
 0x2c0   : > { %v706_v11 = vpop.f32.mrf.mxu1  ;;  %v749_v12 = vpop.f32.mrf.mxu0 }
 0x2c1   : > { %v803_v13 = vadd.f32 %v749_v12, %v610_v8 }
 0x2c2   : > { %v1061_v14 = vpop.f32.mrf.mxu1  ;;  %v1066_v15 = vpop.f32.mrf.mxu0  ;;  %v824_v25 = vld [vmem:[#allocation4] sm:$0xff] }
 0x2c3   : > { %807 = vst.msk [vmem:[#allocation4 + $0x10] sm:$0xff] %vm285_vm0, %v803_v13 }
 0x2c4   : > { %v752_v17 = vpop.f32.mrf.mxu0  ;;  %v795_v18 = vpop.f32.mrf.mxu1 }
 0x2c5   : > { %v804_v19 = vadd.f32 %v795_v18, %v611_v16 }
 0x2c6   : > { %v1067_v20 = vpop.f32.mrf.mxu0  ;;  %v1072_v21 = vpop.f32.mrf.mxu1  ;;  %v825_v27 = vld [vmem:[#allocation4 + $0x8] sm:$0xff] }
 0x2c7   : > { %808 = vst.msk [vmem:[#allocation4 + $0x18] sm:$0xff] %vm285_vm0, %v804_v19 }
 0x2c8   : > { %v798_v22 = vpop.f32.mrf.mxu1 }
 0x2ca   : > { %v1073_v23 = vpop.f32.mrf.mxu1  ;;  %v826_v32 = vld [vmem:[#allocation4 + $0x10] sm:$0xff] }
 0x2ce   : > { %v827_v36 = vld [vmem:[#allocation4 + $0x18] sm:$0xff] }
 0x314   : > { %v831_v24 = vpop.permute.xlu1 %830 }
 0x315   : > { %v848_v0 = vmul.f32 %v831_v24, %v824_v25 }
 0x317   : > { %v852_v26 = vpack.c.bf16 %v848_v0, %v848_v0 }
 0x318   : > { %v836_v28 = vpop.permute.xlu0 %835 }
 0x319   : > { %857 = vst.msk [vmem:[%s270_s28] sm:$0xf] %vm856_vm4, %v852_v26  ;;  %v849_v29 = vmul.f32 %v836_v28, %v825_v27 }
 0x31b   : > { %v853_v30 = vpack.c.bf16 %v849_v29, %v849_v29 }
 0x31c   : > { %v841_v31 = vpop.permute.xlu1 %840 }
 0x31d   : > { %858 = vst.msk [vmem:[%s270_s28 + $0x4] sm:$0xf] %vm856_vm4, %v853_v30  ;;  %v850_v33 = vmul.f32 %v841_v31, %v826_v32 }
 0x31f   : > { %v854_v34 = vpack.c.bf16 %v850_v33, %v850_v33 }
 0x320   : > { %v846_v35 = vpop.permute.xlu0 %845 }
 0x321   : > { %859 = vst.msk [vmem:[%s270_s28 + $0x8] sm:$0xf] %vm856_vm4, %v854_v34  ;;  %v851_v37 = vmul.f32 %v846_v35, %v827_v36 }
 0x323   : > { %v855_v38 = vpack.c.bf16 %v851_v37, %v851_v37 }
 0x325   : > { %860 = vst.msk [vmem:[%s270_s28 + $0xc] sm:$0xf] %vm856_vm4, %v855_v38 }
 0x326 PF: > { %s13_s14 = sadd.s32 1, %s1150_s14   ;;  %s1359_s12 = smov %s1146_s13 }
 0x327   : > { %p10_p5 = scmp.ge.s32.totalorder %s13_s14, 4   ;;  %s1360_s13 = smov %s1362_s15 }
 0x329   :  { %12 = sbr.rel (!%p10_p5) target bundleno = 2 (0x2), region = 76 }

// kernel: transformer_pallas.3
= control target key start
LH: loop header
LB: loop body
LE: loop exit
PB: predicated region body
PF: predicated region fallthrough
CT: control target
= control target key end

     0   :  { %s1294_s29 = smov 0   ;;  %s1296_s30 = smov 0   ;;  %s1415_s0 = inlined_call_operand.vmem [shape: f32[2,8,32], index: 0, kind: input, shape index: {}]   ;;  %s1416_s1 = inlined_call_operand.vmem [shape: f32[1,32], index: 1, kind: input, shape index: {}]   ;;  %s1417_s2 = inlined_call_operand.vmem [shape: f32[1,32], index: 2, kind: input, shape index: {}]   ;;  %s1418_s3 = inlined_call_operand.vmem [shape: bf16[32,64], index: 3, kind: input, shape index: {}]   ;;  %s1419_s4 = inlined_call_operand.vmem [shape: bf16[32,32], index: 4, kind: input, shape index: {}]   ;;  %s1420_s5 = inlined_call_operand.vmem [shape: f32[1,64], index: 5, kind: input, shape index: {}]   ;;  %s1421_s6 = inlined_call_operand.vmem [shape: bf16[32,32], index: 6, kind: input, shape index: {}]   ;;  %s1422_s7 = inlined_call_operand.vmem [shape: bf16[32,32], index: 7, kind: input, shape index: {}]   ;;  %s1423_s8 = inlined_call_operand.vmem [shape: bf16[32,32], index: 8, kind: input, shape index: {}]   ;;  %s1424_s9 = inlined_call_operand.vmem [shape: f32[1,32], index: 9, kind: input, shape index: {}]   ;;  %s1425_s10 = inlined_call_operand.vmem [shape: f32[1,32], index: 10, kind: input, shape index: {}]   ;;  %s1426_s11 = inlined_call_operand.vmem [shape: f32[1,32], index: 11, kind: input, shape index: {}]   ;;  %s1427_s12 = inlined_call_operand.vmem [shape: bf16[2,8,32], index: 12, kind: output, shape index: {0}]   ;;  %s1428_s13 = inlined_call_operand.vmem [shape: bf16[2,8,32], index: 13, kind: output, shape index: {1}]   ;;  %s1429_s14 = inlined_call_operand.vmem [shape: bf16[2,8,32], index: 14, kind: output, shape index: {2}]  }
   0x1   :  { %s1298_s15 = smov 0  }
   0x2 LB: > { %s37_s16 = sadd.s32 1, %s1210_s30  ;;  %p1068_p0 = scmp.ge.s32.totalorder %s1214_s15, 1  ;;  %s1214_s15 = sphi %s1298_s15, %s25_s15   ;;  %s1210_s30 = sphi %s1296_s30, %s1431_s30   ;;  %s1206_s29 = sphi %s1294_s29, %s1430_s29  }
   0x3   : > { %p39_p1 = scmp.ge.s32.totalorder %s37_s16, 2  ;;  %p439_p2 = scmp.lt.s32.totalorder %s1214_s15, 3 }
   0x5   : > { %s1433_s16 = smov (%p39_p1, %s37_s16), 0  ;;  %p440_p3 = pnand %p1068_p0, %p439_p2 }
   0x6   : > { %p503_p4 = scmp.lt.s32.totalorder (!%p440_p3), %s1206_s29, 1  ;;  %s1218_s21 = smov (!%p440_p3), 96  }
   0x7   : > { %443 = sbr.rel (%p440_p3) target bundleno = 998 (0x3e6), region = 68 }
   0xc   : > { %s1435_s29 = smov (!%p503_p4, %s1206_s29), 1  ;;  %vm535_vm0 = vcmask 261120   ;;  %v1178_v7 = vld [vmem:[%s1418_s3 + $0x8] sm:$0xff]   ;;  %v1216_v9 = vmov 0.0   ;;  %v1180_v10 = vld [vmem:[%s1418_s3] sm:$0xff]   ;;  %vm1217_vm1 = vmmov 0  }
   0xd   : > { %s1069_s17 = sshll.u32 %s1435_s29, 3  ;;  %v1179_v8 = vld [vmem:[%s1419_s4 + $0x8] sm:$0xff]   ;;  %1111 = vmatprep.subr.bf16.mxu0 %v1216_v9  ;;  %1119 = vmatprep.subr.bf16.mxu1 %v1216_v9  ;;  %v1181_v11 = vld [vmem:[%s1419_s4] sm:$0xff]   ;;  %vm681_vm2 = vcmask 523264   ;;  %s1070_s26 = sshll.u32 %s1435_s29, 2  ;;  %vm767_vm3 = vcmask 257024  }
   0xe   : > { %s509_s20 = scalar_lea.vmem %s1415_s0, %s1069_s17  ;;  %1112 = vmatpush3.bf16.msra.mxu0 %v1178_v7  ;;  %1120 = vmatpush3.bf16.msra.mxu1 %v1179_v8  ;;  %v1073_v16 = vld [vmem:[%s1416_s1] ss:$0 sm:$0xff]  ;;  %v1182_v32 = vld [vmem:[%s1421_s6 + $0x8] sm:$0xff]   ;;  %s516_s17 = scalar_lea.vmem %s1427_s12, %s1070_s26 }
   0xf   : > { %v532_v0 = vld [vmem:[%s509_s20] sm:$0xff]  ;;  %1113 = vmatprep.subr.bf16.mxu0 %v1216_v9  ;;  %1121 = vmatprep.subr.bf16.mxu1 %v1216_v9  ;;  %v1186_v34 = vld [vmem:[%s1422_s7 + $0x8] sm:$0xff]   ;;  %s523_s27 = scalar_lea.vmem %s1428_s13, %s1070_s26 }
  0x10   : > { %v536_v1 = vsel %vm535_vm0, %v532_v0, 0.0  ;;  %1115 = vmatprep.mubr.msk.bf16.mxu0 %vm1217_vm1, %v1216_v9  ;;  %1123 = vmatprep.mubr.msk.bf16.mxu1 %vm1217_vm1, %v1216_v9  ;;  %v1074_v18 = vld [vmem:[%s1417_s2] ss:$0 sm:$0xff]  ;;  %v1184_v43 = vld [vmem:[%s1423_s8 + $0x8] sm:$0xff]  }
  0x11   : > { %537 = vadd.xlane.f32.xlu0 %v536_v1  ;;  %v1183_v33 = vld [vmem:[%s1421_s6] sm:$0xff]  }
  0x12   : > { %1114 = vmatpush3.bf16.msra.mxu0 %v1180_v10  ;;  %1122 = vmatpush3.bf16.msra.mxu1 %v1181_v11  ;;  %v1187_v35 = vld [vmem:[%s1422_s7] sm:$0xff]  }
  0x13   : > { %1127 = vmatprep.subr.bf16.mxu0 %v1216_v9  ;;  %1135 = vmatprep.subr.bf16.mxu1 %v1216_v9  ;;  %v1081_v40 = vld [vmem:[%s1420_s5] ss:$0 sm:$0xff] }
  0x14   : > { %v1185_v45 = vld [vmem:[%s1423_s8] sm:$0xff]  }
  0x15   : > { %v1082_v48 = vld [vmem:[%s1424_s9] ss:$0 sm:$0xff] }
  0x16   : > { %v1090_v55 = vld [vmem:[%s1426_s11] ss:$0 sm:$0xff] }
  0x17   : > { %v1086_v62 = vld [vmem:[%s1425_s10] ss:$0 sm:$0xff] }
  0x9a   : > { %v538_v2 = vpop.xlane.xlu0 %537 }
  0x9b   : > { %v540_v3 = vmul.f32 0.03125, %v538_v2 }
  0x9d   : > { %v541_v4 = vsub.f32 %v532_v0, %v540_v3 }
  0x9f   : > { %v542_v5 = vmul.f32 %v541_v4, %v541_v4 }
  0xa1   : > { %v543_v6 = vsel %vm535_vm0, %v542_v5, 0.0 }
  0xa2   : > { %544 = vadd.xlane.f32.xlu0 %v543_v6 }
 0x12b   : > { %v545_v12 = vpop.xlane.xlu0 %544 }
 0x12c   : > { %v546_v13 = vmul.f32 0.03125, %v545_v12 }
 0x12e   : > { %v547_v14 = vadd.f32 1e-05, %v546_v13 }
 0x130   : > { %1188 = vrsqrt.f32 %v547_v14 }
 0x13d   : > { %v1189_v15 = vpop.eup %1188 }
 0x13e   : > { %v549_v17 = vmul.f32 %v1189_v15, %v541_v4 }
 0x140   : > { %v556_v19 = vmul.f32 %v1073_v16, %v549_v17 }
 0x142   : > { %v563_v20 = vadd.f32 %v1074_v18, %v556_v19 }
 0x144   : > { %v564_v21 = vpack.c.bf16 %v563_v20, %v563_v20 }
 0x146   : > { %1116 = vmatmul.mubr.msk.bf16.vlgmr.msra.gmra.mxu0 %vm535_vm0, %v564_v21  ;;  %1124 = vmatmul.mubr.msk.bf16.vlgmr.msra.gmra.mxu1 %vm535_vm0, %v564_v21 }
 0x147   : > { %1131 = vmatprep.mubr.msk.bf16.mxu0 %vm1217_vm1, %v1216_v9  ;;  %1139 = vmatprep.mubr.msk.bf16.mxu1 %vm1217_vm1, %v1216_v9 }
 0x148   : > { %1128 = vmatpush3.bf16.msra.mxu0 %v1182_v32  ;;  %1136 = vmatpush3.bf16.msra.mxu1 %v1186_v34 }
 0x149   : > { %1129 = vmatprep.subr.bf16.mxu0 %v1216_v9  ;;  %1137 = vmatprep.subr.bf16.mxu1 %v1216_v9 }
 0x14c   : > { %1130 = vmatpush3.bf16.msra.mxu0 %v1183_v33  ;;  %1138 = vmatpush3.bf16.msra.mxu1 %v1187_v35 }
 0x14d   : > { %1143 = vmatprep.subr.bf16.mxu0 %v1216_v9 }
 0x206   : > { %v618_v22 = vpop.f32.mrf.mxu0  ;;  %v674_v23 = vpop.f32.mrf.mxu1 }
 0x207   : > { %v680_v24 = vmul.f32 %v618_v22, %v618_v22  ;;  %v699_v46 = vpack.c.bf16 %v674_v23, %v674_v23 }
 0x208   : > { %v1117_v25 = vpop.f32.mrf.mxu0  ;;  %v1125_v26 = vpop.f32.mrf.mxu1 }
 0x209   : > { %v682_v27 = vsel %vm681_vm2, %v680_v24, 0.0 }
 0x20a   : > { %v677_v28 = vpop.f32.mrf.mxu1  ;;  %683 = vadd.xlane.f32.xlu1 %v682_v27  ;;  %v621_v29 = vpop.f32.mrf.mxu0 }
 0x20c   : > { %v1118_v30 = vpop.f32.mrf.mxu0  ;;  %v1126_v31 = vpop.f32.mrf.mxu1 }
 0x293   : > { %v684_v36 = vpop.xlane.xlu1 %683 }
 0x294   : > { %v686_v37 = vmul.f32 0.015625, %v684_v36 }
 0x296   : > { %v687_v38 = vadd.f32 1e-06, %v686_v37 }
 0x298   : > { %1190 = vrsqrt.f32 %v687_v38 }
 0x2a5   : > { %v1191_v39 = vpop.eup %1190 }
 0x2a6   : > { %v689_v41 = vmul.f32 %v1191_v39, %v618_v22 }
 0x2a8   : > { %v697_v42 = vmul.f32 %v1081_v40, %v689_v41 }
 0x2aa   : > { %v698_v44 = vpack.c.bf16 %v697_v42, %v697_v42 }
 0x2ac   : > { %781 = vrot.lane.b32.xlu1 %v698_v44, %s1218_s21  ;;  %1132 = vmatmul.mubr.msk.bf16.vlgmr.msra.gmra.mxu0 %vm535_vm0, %v698_v44  ;;  %s530_s21 = scalar_lea.vmem %s1429_s14, %s1070_s26 }
 0x2ad   : > { %1144 = vmatpush3.bf16.msra.mxu0 %v1184_v43  ;;  %1147 = vmatprep.mubr.msk.bf16.mxu0 %vm1217_vm1, %v1216_v9 }
 0x2ae   : > { %1145 = vmatprep.subr.bf16.mxu0 %v1216_v9 }
 0x2b1   : > { %1146 = vmatpush3.bf16.msra.mxu0 %v1185_v45 }
 0x2b4   : > { %1148 = vmatmul.mubr.msk.bf16.vlgmr.msra.gmra.mxu0 %vm535_vm0, %v699_v46 }
 0x31e   : > { %v782_v47 = vpop.permute.xlu1 %781 }
 0x31f   : > { %1140 = vmatmul.mubr.msk.bf16.vlgmr.msra.gmra.mxu1 %vm535_vm0, %v782_v47 }
 0x36c   : > { %v760_v49 = vpop.f32.mrf.mxu0 }
 0x36d   : > { %v761_v50 = vadd.f32 %v1082_v48, %v760_v49 }
 0x36e   : > { %v1133_v51 = vpop.f32.mrf.mxu0 }
 0x36f   : > { %v766_v52 = vpack.c.bf16 %v761_v50, %v761_v50 }
 0x370   : > { %v763_v53 = vpop.f32.mrf.mxu0 }
 0x371   : > { %768 = vst.msk [vmem:[%s516_s17] sm:$0xf] %vm767_vm3, %v766_v52 }
 0x372   : > { %v1134_v54 = vpop.f32.mrf.mxu0 }
 0x374   : > { %v900_v56 = vpop.f32.mrf.mxu0 }
 0x375   : > { %v901_v57 = vadd.f32 %v1090_v55, %v900_v56 }
 0x376   : > { %v1149_v58 = vpop.f32.mrf.mxu0 }
 0x377   : > { %v906_v59 = vpack.c.bf16 %v901_v57, %v901_v57 }
 0x378   : > { %v903_v60 = vpop.f32.mrf.mxu0 }
 0x379   : > { %907 = vst.msk [vmem:[%s530_s21] sm:$0xf] %vm767_vm3, %v906_v59 }
 0x37a   : > { %v1150_v61 = vpop.f32.mrf.mxu0 }
 0x3df   : > { %v832_v63 = vpop.f32.mrf.mxu1 }
 0x3e0   : > { %v833_v0 = vadd.f32 %v1086_v62, %v832_v63 }
 0x3e1   : > { %v1141_v1 = vpop.f32.mrf.mxu1 }
 0x3e2   : > { %v838_v2 = vpack.c.bf16 %v833_v0, %v833_v0 }
 0x3e3   : > { %v835_v3 = vpop.f32.mrf.mxu1 }
 0x3e4   : > { %839 = vst.msk [vmem:[%s523_s27] sm:$0xf] %vm767_vm3, %v838_v2 }
 0x3e5   : > { %v1142_v4 = vpop.f32.mrf.mxu1 }
 0x3e6 PF: > { %s25_s15 = sadd.s32 1, %s1214_s15   ;;  %s1430_s29 = smov %s1210_s30 }
 0x3e7   : > { %p22_p5 = scmp.ge.s32.totalorder %s25_s15, 4   ;;  %s1431_s30 = smov %s1433_s16 }
 0x3e9   :  { %24 = sbr.rel (!%p22_p5) target bundleno = 2 (0x2), region = 122 }

// kernel: transformer_pallas.5
= control target key start
LH: loop header
LB: loop body
LE: loop exit
PB: predicated region body
PF: predicated region fallthrough
CT: control target
= control target key end

     0   :  { %s1281_s0 = inlined_call_operand.vmem [shape: bf16[2,8,32], index: 0, kind: input, shape index: {}]   ;;  %s1282_s1 = inlined_call_operand.vmem [shape: f32[2,8,32], index: 1, kind: input, shape index: {}]   ;;  %s1283_s2 = inlined_call_operand.vmem [shape: bf16[32,32], index: 2, kind: input, shape index: {}]   ;;  %s1284_s3 = inlined_call_operand.vmem [shape: f32[1,32], index: 3, kind: input, shape index: {}]   ;;  %s1285_s4 = inlined_call_operand.vmem [shape: f32[1,32], index: 4, kind: input, shape index: {}]   ;;  %s1286_s5 = inlined_call_operand.vmem [shape: f32[1,32], index: 5, kind: input, shape index: {}]   ;;  %s1287_s6 = inlined_call_operand.vmem [shape: bf16[32,128], index: 6, kind: input, shape index: {}]   ;;  %s1288_s7 = inlined_call_operand.vmem [shape: f32[1,128], index: 7, kind: input, shape index: {}]   ;;  %s1289_s8 = inlined_call_operand.vmem [shape: bf16[128,32], index: 8, kind: input, shape index: {}]   ;;  %s1290_s9 = inlined_call_operand.vmem [shape: f32[1,32], index: 9, kind: input, shape index: {}]   ;;  %s1291_s10 = inlined_call_operand.hbm [shape: f32[2,8,32], index: 10, kind: output, shape index: {}]  }
   0x1   :  { %1292 = sst [smem:[#allocation5_spill]] %s1283_s2 }
   0x2   :  { %15 = vsyncpa [#allocation3], 0 }
   0x3   :  { %17 = vsyncpa [#allocation3 + $0x1], 0  ;;  %s1091_s13 = smov 0   ;;  %s1093_s14 = smov 0  }
   0x4   :  { %s1095_s15 = smov 0   ;;  %s1097_s16 = smov 0  }
   0x5   :  { %s1099_s17 = smov 0   ;;  %s1101_s18 = smov 0  }
   0x6 LB: > { %s800_s19 = sadd.s32 4294967295, %s1031_s18   ;;  %s801_s20 = sadd.s32 4294967294, %s1031_s18   ;;  %s1031_s18 = sphi %s1101_s18, %s23_s18   ;;  %s1027_s17 = sphi %s1099_s17, %s1300_s17   ;;  %s1023_s16 = sphi %s1097_s16, %s1299_s16   ;;  %s1019_s15 = sphi %s1095_s15, %s1298_s15   ;;  %s1015_s14 = sphi %s1093_s14, %s1297_s14   ;;  %s1011_s13 = sphi %s1091_s13, %s1296_s13  }
   0x7   : > { %s35_s21 = sadd.s32 1, %s1027_s17  ;;  %s268_s22 = sadd.s32 1, %s1019_s15 }
   0x8   : > { %p37_p0 = scmp.ge.s32.totalorder %s35_s21, 2  ;;  %p278_p1 = scmp.ne.s32.totalorder %s1019_s15, %s1015_s14 }
   0x9   : > { %p279_p2 = scmp.eq.s32.totalorder %s800_s19, 1  ;;  %p284_p3 = scmp.ne.s32.totalorder %s1015_s14, %s1011_s13 }
   0xa   : > { %s1302_s21 = smov (%p37_p0, %s35_s21), 0  ;;  %p285_p5 = scmp.eq.s32.totalorder %s801_s20, 1 }
   0xb   : > { %p1131_p4 = por %p279_p2, %p278_p1  ;;  %s263_s24 = ssub.s32 %s1027_s17, %s1302_s21 }
   0xc   : > { %p804_p6 = scmp.ge.s32.totalorder %s1031_s18, 1  ;;  %p266_p7 = scmp.eq.s32.totalorder %s263_s24, 0 }
   0xd   : > { %p1138_p8 = por %p285_p5, %p284_p3  ;;  %p347_p9 = scmp.lt.s32.totalorder %s1031_s18, 3 }
   0xe   : > { %s1144_s26 = scalar_select %p266_p7, %s1019_s15, %s268_s22  }
   0xf   : > { %p348_p10 = pnand %p804_p6, %p347_p9 }
  0x10   : > { %s1295_s2 = sld [smem:[#allocation5_spill]] (!%p348_p10)  ;;  %p394_p11 = scmp.lt.s32.totalorder (!%p348_p10), %s1023_s16, 1 }
  0x11   : > { %351 = sbr.rel (%p348_p10) target bundleno = 976 (0x3d0), region = 60  ;;  %s391_s20 = sand.u32 (!%p348_p10), 1, %s1015_s14  }
  0x12   : > { %s828_s28 = sshll.u32 (!%p348_p10), %s1023_s16, 7 }
  0x16   : > { %v939_v0 = vld [vmem:[%s1295_s2 + $0x8] sm:$0xff]   ;;  %v1033_v1 = vmov 0.0   ;;  %v940_v2 = vld [vmem:[%s1295_s2] sm:$0xff]   ;;  %vm1034_vm0 = vmmov 0   ;;  %s395_s11 = scalar_select %p394_p11, %s1023_s16, 1  ;;  %vm433_vm1 = vcmask 261120  }
  0x17   : > { %846 = vmatprep.subr.bf16.mxu1 %v1033_v1  ;;  %862 = vmatprep.subr.bf16.mxu0 %v1033_v1  ;;  %v808_v4 = vld [vmem:[%s1284_s3] ss:$0 sm:$0xff]  ;;  %v941_v18 = vld [vmem:[%s1287_s6 + $0x8] sm:$0xff]   ;;  %v943_v30 = vld [vmem:[%s1289_s8 + $0x38] sm:$0xff]   ;;  %s700_s16 = scalar_lea.sflag [#allocation3], %s391_s20 }
  0x18   : > { %847 = vmatpush3.bf16.msra.mxu1 %v939_v0  ;;  %850 = vmatprep.mubr.msk.bf16.mxu1 %vm1034_vm0, %v1033_v1  ;;  %s806_s12 = sshll.u32 %s395_s11, 2  ;;  %s807_s24 = sshll.u32 %s395_s11, 3  ;;  %v942_v19 = vld [vmem:[%s1287_s6] sm:$0xff]   ;;  %v944_v31 = vld [vmem:[%s1289_s8 + $0x30] sm:$0xff]   ;;  %v945_v32 = vld [vmem:[%s1289_s8 + $0x28] sm:$0xff]  }
  0x19   : > { %848 = vmatprep.subr.bf16.mxu1 %v1033_v1  ;;  %878 = vmatprep.mubr.msk.bf16.mxu0 %vm1034_vm0, %v1033_v1  ;;  %s400_s22 = scalar_lea.vmem %s1281_s0, %s806_s12  ;;  %s407_s29 = scalar_lea.vmem %s1282_s1, %s807_s24  ;;  %v812_v24 = vld [vmem:[%s1285_s4] ss:$0 sm:$0xff]  ;;  %v947_v34 = vld [vmem:[%s1289_s8 + $0x18] sm:$0xff]   ;;  %v948_v35 = vld [vmem:[%s1289_s8 + $0x10] sm:$0xff]  }
  0x1a   : > { %v409_v3 = vld [vmem:[%s400_s22] sm:$0xf]  ;;  %863 = vmatpush3.bf16.msra.mxu0 %v943_v30  ;;  %v949_v36 = vld [vmem:[%s1289_s8 + $0x8] sm:$0xff]   ;;  %s805_s22 = sshll.u32 %s391_s20, 3  ;;  %s1234_s12 = scalar_lea.hbm %s1291_s10, %s828_s28 }
  0x1b   : > { %v477_v6 = vld [vmem:[%s407_s29] sm:$0xff]  ;;  %864 = vmatprep.subr.bf16.mxu0 %v1033_v1  ;;  %s393_s29 = scalar_lea.vmem [#allocation2], %s805_s22  ;;  %s1035_s22 = smov [#allocation2]  }
  0x1c   : > { %849 = vmatpush3.bf16.msra.mxu1 %v940_v2  ;;  %v813_v26 = vld [vmem:[%s1286_s5] ss:$0 sm:$0xff]  ;;  %s714_s30 = sshll.u32 %s393_s29, 4  ;;  %s959_s24 = sshll.u32 %s1035_s22, 4  ;;  %s1236_s30 = int_to_ptr.vmem [resolvable:$true] %s714_s30  ;;  %s960_s24 = int_to_ptr.vmem [resolvable:$false] %s959_s24 }
  0x1d   : > { %854 = vmatprep.subr.bf16.mxu1 %v1033_v1  ;;  %v946_v33 = vld [vmem:[%s1289_s8 + $0x20] sm:$0xff]   ;;  %s955_s19 = scalar_lea.vmem %s1236_s30, 128  ;;  %s961_s27 = scalar_lea.vmem %s960_s24, 256 }
  0x1e   : > { %865 = vmatpush3.bf16.msra.mxu0 %v944_v31  ;;  %v950_v37 = vld [vmem:[%s1289_s8] sm:$0xff]   ;;  %p956_p12 = scmp.ne.s32.totalorder %s1236_s30, %s955_s19  ;;  %p962_p1 = scmp.lt.s32.totalorder %s1236_s30, %s960_s24 }
  0x1f   : > { %851 = vmatmul.mubr.msk.bf16.vlgmr.msra.gmra.mxu1 %vm433_vm1, %v409_v3  ;;  %866 = vmatprep.subr.bf16.mxu0 %v1033_v1  ;;  %v814_v38 = vld [vmem:[%s1288_s7] ss:$0 sm:$0xff]  ;;  %p963_p2 = scmp.lt.s32.totalorder %s961_s27, %s955_s19 }
  0x20   : > { %858 = vmatprep.mubr.msk.bf16.mxu1 %vm1034_vm0, %v1033_v1  ;;  %855 = vmatpush3.bf16.msra.mxu1 %v941_v18  ;;  %v818_v54 = vld [vmem:[%s1290_s9] ss:$0 sm:$0xff]  ;;  %p957_p13 = pnand %p956_p12, %p1131_p4 }
  0x21   : > { %856 = vmatprep.subr.bf16.mxu1 %v1033_v1  ;;  %p964_p3 = por %p963_p2, %p962_p1 }
  0x22   : > { %867 = vmatpush3.bf16.msra.mxu0 %v945_v32  ;;  %p958_p0 = pneg %p957_p13 }
  0x23   : > { %868 = vmatprep.subr.bf16.mxu0 %v1033_v1 }
  0x24   : > { %857 = vmatpush3.bf16.msra.mxu1 %v942_v19  ;;  %p965_p5 = pnand %p964_p3, %p958_p0 }
  0x26   : > { %869 = vmatpush3.bf16.msra.mxu0 %v946_v33 }
  0x27   : > { %870 = vmatprep.subr.bf16.mxu0 %v1033_v1 }
  0x2a   : > { %871 = vmatpush3.bf16.msra.mxu0 %v947_v34 }
  0x2b   : > { %872 = vmatprep.subr.bf16.mxu0 %v1033_v1 }
  0x2e   : > { %873 = vmatpush3.bf16.msra.mxu0 %v948_v35 }
  0x2f   : > { %874 = vmatprep.subr.bf16.mxu0 %v1033_v1 }
  0x32   : > { %875 = vmatpush3.bf16.msra.mxu0 %v949_v36 }
  0x33   : > { %876 = vmatprep.subr.bf16.mxu0 %v1033_v1 }
  0x36   : > { %877 = vmatpush3.bf16.msra.mxu0 %v950_v37 }
  0xdf   : > { %v471_v5 = vpop.f32.mrf.mxu1 }
  0xe0   : > { %v472_v7 = vadd.f32 %v808_v4, %v471_v5 }
  0xe1   : > { %v852_v8 = vpop.f32.mrf.mxu1 }
  0xe2   : > { %v1171_v9 = vadd.f32 %v477_v6, %v472_v7 }
  0xe3   : > { %v474_v10 = vpop.f32.mrf.mxu1 }
  0xe4   : > { %v481_v11 = vsel %vm433_vm1, %v1171_v9, 0.0 }
  0xe5   : > { %482 = vadd.xlane.f32.xlu0 %v481_v11  ;;  %v853_v12 = vpop.f32.mrf.mxu1 }
 0x16e   : > { %v483_v13 = vpop.xlane.xlu0 %482 }
 0x16f   : > { %v485_v14 = vmul.f32 0.03125, %v483_v13 }
 0x171   : > { %v486_v15 = vsub.f32 %v1171_v9, %v485_v14 }
 0x173   : > { %v487_v16 = vmul.f32 %v486_v15, %v486_v15 }
 0x175   : > { %v488_v17 = vsel %vm433_vm1, %v487_v16, 0.0 }
 0x176   : > { %489 = vadd.xlane.f32.xlu0 %v488_v17 }
 0x1ff   : > { %v490_v20 = vpop.xlane.xlu0 %489 }
 0x200   : > { %v491_v21 = vmul.f32 0.03125, %v490_v20 }
 0x202   : > { %v492_v22 = vadd.f32 1e-05, %v491_v21 }
 0x204   : > { %951 = vrsqrt.f32 %v492_v22 }
 0x211   : > { %v952_v23 = vpop.eup %951 }
 0x212   : > { %v494_v25 = vmul.f32 %v952_v23, %v486_v15 }
 0x214   : > { %v501_v27 = vmul.f32 %v812_v24, %v494_v25 }
 0x216   : > { %v508_v28 = vadd.f32 %v813_v26, %v501_v27 }
 0x218   : > { %v509_v29 = vpack.c.bf16 %v508_v28, %v508_v28 }
 0x21a   : > { %859 = vmatmul.mubr.msk.bf16.vlgmr.msra.gmra.mxu1 %vm433_vm1, %v509_v29 }
 0x2da   : > { %v570_v39 = vpop.f32.mrf.mxu1 }
 0x2db   : > { %v571_v40 = vadd.f32 %v814_v38, %v570_v39 }
 0x2dc   : > { %v860_v41 = vpop.f32.mrf.mxu1 }
 0x2dd   : > { %v576_v42 = vmul.f32 %v571_v40, %v571_v40 }
 0x2de   : > { %v573_v43 = vpop.f32.mrf.mxu1 }
 0x2df   : > { %v577_v44 = vmul.f32 %v576_v42, %v571_v40 }
 0x2e0   : > { %v861_v45 = vpop.f32.mrf.mxu1 }
 0x2e1   : > { %v578_v46 = vmul.f32 0.044715, %v577_v44 }
 0x2e3   : > { %v579_v47 = vadd.f32 %v578_v46, %v571_v40 }
 0x2e5   : > { %v580_v48 = vmul.f32 0.7978846, %v579_v47 }
 0x2e7   : > { %953 = vtanh.f32 %v580_v48 }
 0x2f4   : > { %v954_v49 = vpop.eup %953 }
 0x2f5   : > { %v582_v50 = vadd.f32 1.0, %v954_v49 }
 0x2f7   : > { %v583_v51 = vmul.f32 0.5, %v582_v50 }
 0x2f9   : > { %v584_v52 = vmul.f32 %v583_v51, %v571_v40 }
 0x2fb   : > { %v585_v53 = vpack.c.bf16 %v584_v52, %v584_v52 }
 0x2fd   : > { %879 = vmatmul.mubr.bf16.vlgmr.msra.gmra.mxu0 %v585_v53 }
 0x3bd   : > { %v691_v55 = vpop.f32.mrf.mxu0 }
 0x3be   : > { %v692_v56 = vadd.f32 %v818_v54, %v691_v55 }
 0x3bf   : > { %v880_v57 = vpop.f32.mrf.mxu0 }
 0x3c0   : > { %v697_v58 = vadd.f32 %v692_v56, %v1171_v9 }
 0x3c1   : > { %v694_v59 = vpop.f32.mrf.mxu0 }
 0x3c2   : > { %698 = vst.msk [vmem:[%s393_s29] sm:$0xff] %vm433_vm1, %v697_v58 }
 0x3c3   : > { %v881_v60 = vpop.f32.mrf.mxu0 }
 0x3c4   : > { %968 = shalt.err (!%p965_p5)
}
 0x3c5   : > { %s969_s28 = scalar_lea.hbm %s1234_s12, 128  ;;  %s973_s2 = scalar_lea.hbm %s1291_s10, 256 }
 0x3c6   : > { %p970_p6 = scmp.ne.s32.totalorder %s1234_s12, %s969_s28  ;;  %p974_p10 = scmp.lt.s32.totalorder %s1234_s12, %s1291_s10 }
 0x3c7   : > { %p975_p11 = scmp.lt.s32.totalorder %s973_s2, %s969_s28 }
 0x3c8   : > { %p971_p7 = pnand %p970_p6, %p1131_p4 }
 0x3c9   : > { %p976_p12 = por %p975_p11, %p974_p10 }
 0x3ca   : > { %p972_p9 = pneg %p971_p7 }
 0x3cc   : > { %p977_p13 = pnand %p976_p12, %p972_p9 }
 0x3ce   : > { %980 = shalt.err (!%p977_p13)
}
 0x3cf   : > { %882 = dma.vmem_to_hbm [thread:$0]  (%p1131_p4), %s1236_s30, 128, %s1234_s12, %s700_s16  }
 0x3d0 PF: > { %p888_p0 = scmp.ge.s32.totalorder %s1031_s18, 2  ;;  %s726_s19 = sand.u32 1, %s1011_s13  }
 0x3d1   : > { %s727_s24 = scalar_lea.sflag [#allocation3], %s726_s19 }
 0x3d2   : > { %p885_p1 = pnand %p888_p0, %p1138_p8 }
 0x3d4   : > { %p886_p2 = pneg %p885_p1 }
 0x3d6   : > { %1006 = dma.done.wait (%p886_p2), %s727_s24, 128  }
 0x3d7   : > { %1008 = vsyncadd (%p886_p2), %s727_s24, 4294967168  ;;  %s23_s18 = sadd.s32 1, %s1031_s18   ;;  %s1296_s13 = smov %s1015_s14 }
 0x3d8   : > { %p20_p3 = scmp.ge.s32.totalorder %s23_s18, 4   ;;  %s1297_s14 = smov %s1019_s15 }
 0x3d9   : > { %s1298_s15 = smov %s1144_s26  ;;  %s1299_s16 = smov %s1027_s17 }
 0x3da   : > { %s1300_s17 = smov %s1302_s21  ;;  %22 = sbr.rel (!%p20_p3) target bundleno = 6 (0x6), region = 98 }
 0x3df   :  { %732 = vsyncpa [#allocation3], 1 }
 0x3e0   :  { %734 = vsyncpa [#allocation3 + $0x1], 1 }

</bundles_post_ra>
